<compile_context>
chip_gen: v6e
topology: v6e:2x2x1
jax: 0.10.0
libtpu: 0.0.40
codegen_flags: <defaults>
</compile_context>

<pallas_src>
import functools

import jax
import jax.numpy as jnp
from jax.experimental import pallas as pl
from jax.experimental.pallas import tpu as pltpu


KERNEL_W = 36  # PatchEmbed Conv2d kernel_size = (1, 36)


# ----------------------------------------------------------------------------
# helpers
# ----------------------------------------------------------------------------
def _round_up(x, m):
    return ((x + m - 1) // m) * m


def _pick(dim, target, granule):
    """(block, padded_dim). Prefer a block that divides `dim` exactly so the
    wrapper never pads/slices the operand; pad only as a last resort."""
    if dim <= target:
        return dim, dim                       # full-dim block (8,128 exemption)
    c = target
    floor_c = max(granule, target // 8)
    while c >= floor_c:
        if dim % c == 0:
            return c, dim
        c -= granule
    return target, _round_up(dim, target)     # rare fallback: pad


def _erf_approx(x):
    # Abramowitz & Stegun 7.1.26 (|err| < 1.5e-7): exact-style GELU using only
    # VPU/EUP-friendly ops (abs, mul, add, exp, div).
    a1, a2, a3, a4, a5 = (0.254829592, -0.284496736, 1.421413741,
                          -1.453152027, 1.061405429)
    p = 0.3275911
    s = jnp.where(x >= 0.0, 1.0, -1.0)
    a = jnp.abs(x)
    t = 1.0 / (1.0 + p * a)
    poly = ((((a5 * t + a4) * t + a3) * t + a2) * t + a1) * t
    return s * (1.0 - poly * jnp.exp(-a * a))


def _gelu(x):
    return 0.5 * x * (1.0 + _erf_approx(x * 0.7071067811865476))


# ----------------------------------------------------------------------------
# tiled linear kernel: y = act(x @ w + b) [+ residual]
# ----------------------------------------------------------------------------
def _linear_kernel(*refs, activation, has_residual):
    if has_residual:
        x_ref, w_ref, b_ref, r_ref, o_ref, acc_ref = refs
    else:
        x_ref, w_ref, b_ref, o_ref, acc_ref = refs
        r_ref = None

    @pl.when(pl.program_id(2) == 0)
    def _():
        acc_ref[...] = jnp.zeros_like(acc_ref)

    # bf16 operands straight from HBM, f32 MXU accumulation (no per-tile casts).
    acc_ref[...] += jnp.dot(x_ref[...], w_ref[...],
                            preferred_element_type=jnp.float32)

    @pl.when(pl.program_id(2) == pl.num_programs(2) - 1)
    def _():
        y = acc_ref[...] + b_ref[...].astype(jnp.float32)
        if activation == "gelu":
            y = _gelu(y)
        if r_ref is not None:                       # fused residual add
            y = y + r_ref[...].astype(jnp.float32)
        o_ref[...] = y.astype(o_ref.dtype)


def linear(x, w, b, activation=None, residual=None, out_dtype=jnp.bfloat16,
           *, tm=512, tn=256, tk=256):
    x = x.astype(jnp.bfloat16)      # no-op for the (already bf16) activations
    w = w.astype(jnp.bfloat16)      # no-op: weights are pre-cast at init
    M, K = x.shape
    K2, N = w.shape
    assert K == K2
    bm, Mp = _pick(M, tm, 8)
    bn, Np = _pick(N, tn, 128)
    bk, Kp = _pick(K, tk, 128)

    xp = x if (Mp == M and Kp == K) else jnp.pad(x, ((0, Mp - M), (0, Kp - K)))
    wp = w if (Kp == K and Np == N) else jnp.pad(w, ((0, Kp - K), (0, Np - N)))
    bp = (b if Np == N else jnp.pad(b, ((0, Np - N),))).reshape(1, Np)
    bp = bp.astype(jnp.float32)

    inputs = [xp, wp, bp]
    in_specs = [
        pl.BlockSpec((bm, bk), lambda i, j, k: (i, k)),
        pl.BlockSpec((bk, bn), lambda i, j, k: (k, j)),
        pl.BlockSpec((1, bn), lambda i, j, k: (0, j)),
    ]
    if residual is not None:
        r = residual.astype(jnp.bfloat16)
        rp = r if (Mp == M and Np == N) else jnp.pad(r, ((0, Mp - M), (0, Np - N)))
        inputs.append(rp)
        in_specs.append(pl.BlockSpec((bm, bn), lambda i, j, k: (i, j)))

    out = pl.pallas_call(
        functools.partial(_linear_kernel, activation=activation,
                          has_residual=residual is not None),
        out_shape=jax.ShapeDtypeStruct((Mp, Np), out_dtype),
        grid=(Mp // bm, Np // bn, Kp // bk),
        in_specs=in_specs,
        out_specs=pl.BlockSpec((bm, bn), lambda i, j, k: (i, j)),
        scratch_shapes=[pltpu.VMEM((bm, bn), jnp.float32)],
        compiler_params=pltpu.CompilerParams(
            dimension_semantics=("parallel", "parallel", "arbitrary")),
    )(*inputs)
    if Mp != M or Np != N:
        out = out[:M, :N]
    return out


# ----------------------------------------------------------------------------
# LayerNorm kernel (per-row, eps=1e-6), bf16 in / bf16 out, f32 math
# ----------------------------------------------------------------------------
def _layernorm_kernel(x_ref, g_ref, b_ref, o_ref, *, eps):
    x = x_ref[...].astype(jnp.float32)
    mu = jnp.mean(x, axis=-1, keepdims=True)
    xc = x - mu
    var = jnp.mean(xc * xc, axis=-1, keepdims=True)
    inv = jax.lax.rsqrt(var + eps)
    y = xc * inv * g_ref[...].astype(jnp.float32) + b_ref[...].astype(jnp.float32)
    o_ref[...] = y.astype(o_ref.dtype)


def layernorm(x, gamma, beta, eps=1e-6, *, tm=1024):
    M, C = x.shape
    bm, Mp = _pick(M, tm, 8)
    xp = x if Mp == M else jnp.pad(x, ((0, Mp - M), (0, 0)))
    out = pl.pallas_call(
        functools.partial(_layernorm_kernel, eps=eps),
        out_shape=jax.ShapeDtypeStruct((Mp, C), jnp.bfloat16),
        grid=(Mp // bm,),
        in_specs=[
            pl.BlockSpec((bm, C), lambda i: (i, 0)),
            pl.BlockSpec((1, C), lambda i: (0, 0)),
            pl.BlockSpec((1, C), lambda i: (0, 0)),
        ],
        out_specs=pl.BlockSpec((bm, C), lambda i: (i, 0)),
        compiler_params=pltpu.CompilerParams(dimension_semantics=("parallel",)),
    )(xp, gamma.reshape(1, C).astype(jnp.float32),
      beta.reshape(1, C).astype(jnp.float32))
    return out if Mp == M else out[:M]


# ----------------------------------------------------------------------------
# kNN attention kernel: (batch, query-tile) per grid step, all heads inside
# ----------------------------------------------------------------------------
def _knn_attn_kernel(q_ref, kv_ref, o_ref, *, num_heads, head_dim, scale, topk):
    # q_ref: (tq, 3C) bf16 rows of the current query tile (q|k|v columns, only
    #        the q part is read);  kv_ref: (N, 3C) bf16 (k and v parts read);
    # o_ref: (tq, C) bf16, already in the (B, N, H*D) layout the projection
    #        expects — no HBM transposes anywhere around this kernel.
    C = num_heads * head_dim
    neg = jnp.float32(-1e30)  # finite "-inf" keeps softmax NaN-free

    for h in range(num_heads):
        lo_c, hi_c = h * head_dim, (h + 1) * head_dim
        # fold scale into q: (tq, D) muls instead of (tq, N)
        q = (q_ref[:, lo_c:hi_c].astype(jnp.float32) * scale).astype(jnp.bfloat16)
        k = kv_ref[:, C + lo_c:C + hi_c]          # (N, D) bf16
        v = kv_ref[:, 2 * C + lo_c:2 * C + hi_c]  # (N, D) bf16

        # scores = q @ k^T (NT dot_general, no explicit transpose), f32 acc
        s = jax.lax.dot_general(
            q, k, (((1,), (1,)), ((), ())), preferred_element_type=jnp.float32
        )  # (tq, N)

        # --- exact top-k threshold: 32-step binary search on a monotone
        #     int32 remap of the f32 scores (independent of topk). ----------
        # keep iff s >= v_k  <=>  (# strictly greater) < topk — identical
        # tie semantics to rank counting (ties at the k-th value all kept).
        u = pltpu.bitcast(s, jnp.int32)
        key = jnp.where(u >= 0, u, u ^ jnp.int32(0x7FFFFFFF))   # order-preserving
        lo = jnp.min(key, axis=-1, keepdims=True) - 1           # count(key>lo) >= k
        hi = jnp.max(key, axis=-1, keepdims=True)               # converges to key(v_k)

        def body(_, carry):
            lo, hi = carry
            # overflow-safe floor midpoint
            mid = (lo >> 1) + (hi >> 1) + (lo & hi & 1)
            gt = jnp.sum((key > mid).astype(jnp.int32), axis=-1, keepdims=True)
            pred = gt >= topk
            lo = jnp.where(pred, mid, lo)
            hi = jnp.where(pred, hi, mid)
            return lo, hi

        lo, hi = jax.lax.fori_loop(0, 32, body, (lo, hi))
        s_kept = jnp.where(key >= hi, s, neg)

        # masked softmax in f32, EUP reciprocal
        m_row = jnp.max(s_kept, axis=-1, keepdims=True)
        p = jnp.exp(s_kept - m_row)
        denom = jnp.sum(p, axis=-1, keepdims=True)
        attn = (p * pl.reciprocal(denom, approx=True)).astype(jnp.bfloat16)

        # write this head's slab immediately -> peak VMEM stays ~1 head
        o_ref[:, lo_c:hi_c] = jnp.dot(
            attn, v, preferred_element_type=jnp.float32).astype(o_ref.dtype)


def _choose_tq(N):
    if N <= 256:
        return N
    for cand in (256, 128, 64):
        if N % cand == 0:
            return cand
    return N   # fallback: full rows per batch (full-dim block, still legal)


def knn_attention(qkv_flat, B, N, num_heads, head_dim, scale, topk):
    C = num_heads * head_dim
    qkv3 = qkv_flat.reshape(B, N, 3 * C).astype(jnp.bfloat16)  # free reshape
    tq = _choose_tq(N)

    # explicit VMEM budget (v7x has 64 MiB physical / 32 MiB scoped default):
    # double-buffered bf16 blocks + per-head f32/int32 (tq,N) temporaries.
    vmem_bytes = (4 * (tq * 3 * C + N * 3 * C + tq * C)   # 2 bufs * 2 B * elems
                  + 16 * tq * N                            # s/key/p temporaries
                  + (4 << 20))
    vmem_bytes = int(min(vmem_bytes, 48 << 20))

    kern = functools.partial(_knn_attn_kernel, num_heads=num_heads,
                             head_dim=head_dim, scale=scale, topk=topk)
    return pl.pallas_call(
        kern,
        out_shape=jax.ShapeDtypeStruct((B, N, C), jnp.bfloat16),
        grid=(B, N // tq),
        in_specs=[
            pl.BlockSpec((None, tq, 3 * C), lambda b, qi: (b, qi, 0)),  # q rows
            pl.BlockSpec((None, N, 3 * C), lambda b, qi: (b, 0, 0)),    # k/v (reused)
        ],
        out_specs=pl.BlockSpec((None, tq, C), lambda b, qi: (b, qi, 0)),
        compiler_params=pltpu.CompilerParams(
            dimension_semantics=("parallel", "parallel"),
            vmem_limit_bytes=vmem_bytes),
    )(qkv3, qkv3)


# ----------------------------------------------------------------------------
# VisionTransformer params / forward
# ----------------------------------------------------------------------------
def init_params(key, cfg):
    E = cfg["embed_dim"]
    Cin = cfg["in_chans"]
    H_img, W_img = cfg["img_size"]
    ph, pw = cfg["patch_size"]
    num_patches = (W_img // pw) * (H_img // ph)
    depth = cfg["depth"]
    hidden = int(E * cfg["mlp_ratio"])
    ncls = cfg["num_classes"]

    keys = jax.random.split(key, 4 + depth)

    def tn(k, shape):  # stand-in for trunc_normal_(std=0.02), pre-cast bf16
        return (0.02 * jax.random.normal(k, shape, jnp.float32)).astype(jnp.bfloat16)

    params = {
        "patch_w": tn(keys[0], (Cin * KERNEL_W, E)),   # conv weight, im2col layout
        "patch_b": jnp.zeros((E,), jnp.float32),
        "cls": tn(keys[1], (1, 1, E)),
        "pos": tn(keys[2], (1, num_patches + 1, E)),
        "head_w": tn(keys[3], (E, ncls)),
        "head_b": jnp.zeros((ncls,), jnp.float32),
        "norm_g": jnp.ones((E,), jnp.float32),
        "norm_b": jnp.zeros((E,), jnp.float32),
        "blocks": [],
    }
    for d in range(depth):
        bk = jax.random.split(keys[4 + d], 4)
        params["blocks"].append({
            "ln1_g": jnp.ones((E,), jnp.float32), "ln1_b": jnp.zeros((E,), jnp.float32),
            "qkv_w": tn(bk[0], (E, 3 * E)), "qkv_b": jnp.zeros((3 * E,), jnp.float32),
            "proj_w": tn(bk[1], (E, E)), "proj_b": jnp.zeros((E,), jnp.float32),
            "ln2_g": jnp.ones((E,), jnp.float32), "ln2_b": jnp.zeros((E,), jnp.float32),
            "fc1_w": tn(bk[2], (E, hidden)), "fc1_b": jnp.zeros((hidden,), jnp.float32),
            "fc2_w": tn(bk[3], (hidden, E)), "fc2_b": jnp.zeros((E,), jnp.float32),
        })
    return params


def patch_embed(x, params, cfg):
    # Conv2d(kernel=(1,36), stride=patch_size) as im2col + tiled Pallas matmul.
    B, Cin, H_img, W_img = x.shape
    ph, pw = cfg["patch_size"]
    out_h = (H_img - 1) // ph + 1
    out_w = (W_img - KERNEL_W) // pw + 1
    rows = x[:, :, 0:(out_h - 1) * ph + 1:ph, :]            # (B,Cin,out_h,W)
    if Cin == 1 and pw == KERNEL_W and W_img == out_w * KERNEL_W:
        # non-overlapping width windows, single channel: im2col == reshape
        patches = rows.reshape(B, out_h * out_w, KERNEL_W)
    else:
        # TODO(synk): general im2col gather / 5-D transpose stays in plain JAX.
        idx = (jnp.arange(out_w) * pw)[:, None] + jnp.arange(KERNEL_W)[None, :]
        patches = rows[:, :, :, idx]                        # (B,Cin,out_h,out_w,KW)
        patches = jnp.transpose(patches, (0, 2, 3, 1, 4)).reshape(
            B, out_h * out_w, Cin * KERNEL_W)
    M = B * out_h * out_w
    tok = linear(patches.reshape(M, Cin * KERNEL_W).astype(jnp.bfloat16),
                 params["patch_w"], params["patch_b"])
    return tok.reshape(B, out_h * out_w, -1)


def vit_forward(x, params, cfg):
    B = x.shape[0]
    E = cfg["embed_dim"]
    H = cfg["num_heads"]
    D = E // H
    scale = cfg["qk_scale"] if cfg["qk_scale"] is not None else D ** (-0.5)
    topk = cfg["topk"]

    tok = patch_embed(x, params, cfg)                               # (B, P, E) bf16
    cls = jnp.broadcast_to(params["cls"], (B, 1, E))
    z = jnp.concatenate([cls, tok], axis=1)                         # (B, N, E)
    N = z.shape[1]
    assert N == params["pos"].shape[1], "patch grid must match pos_embed"
    # TODO(synk): cls concat + pos add are plain-JAX data movement (run once).
    zf = (z + params["pos"]).reshape(B * N, E)                      # bf16 residual stream

    for blk in params["blocks"]:
        # --- kNN attention branch (residual fused into proj epilogue) ---
        h1 = layernorm(zf, blk["ln1_g"], blk["ln1_b"])
        qkv = linear(h1, blk["qkv_w"], blk["qkv_b"])                # (B*N, 3E) bf16
        a = knn_attention(qkv, B, N, H, D, scale, topk)             # (B, N, E) bf16
        zf = linear(a.reshape(B * N, E), blk["proj_w"], blk["proj_b"],
                    residual=zf)                                    # dropout/drop_path p=0
        # --- MLP branch (residual fused into fc2 epilogue) ---
        h2 = layernorm(zf, blk["ln2_g"], blk["ln2_b"])
        hm = linear(h2, blk["fc1_w"], blk["fc1_b"], activation="gelu")
        zf = linear(hm, blk["fc2_w"], blk["fc2_b"], residual=zf)

    zn = layernorm(zf, params["norm_g"], params["norm_b"])
    cls_tok = zn.reshape(B, N, E)[:, 0]                             # (B, E)
    # pre_logits = Identity (representation_size=None)
    return linear(cls_tok, params["head_w"], params["head_b"],
                  out_dtype=jnp.float32)                            # (B, num_classes)


if __name__ == "__main__":
    cfg = dict(
        img_size=(16, 72),    # small; conv patch count matches pos_embed count
        patch_size=(8, 36),   # width stride == conv kernel width (non-overlapping)
        in_chans=1,
        embed_dim=32,
        depth=2,
        num_heads=4,          # head_dim = 8
        mlp_ratio=4.0,
        num_classes=1,
        qk_scale=None,
        topk=3,               # spec default 100 assumes N >= 100; here N = 5 tokens
    )
    key = jax.random.PRNGKey(0)
    kx, kp = jax.random.split(key)
    x = jax.random.normal(kx, (2, cfg["in_chans"]) + tuple(cfg["img_size"]),
                          jnp.float32)
    params = init_params(kp, cfg)

    fwd = jax.jit(functools.partial(vit_forward, cfg=cfg))
    y = fwd(x, params)
    y = jax.block_until_ready(y)
    assert y.shape == (2, cfg["num_classes"])
    assert bool(jnp.all(jnp.isfinite(y)))
    print("KERNEL_OK")
</pallas_src>

<mosaic_0001>
module attributes {stable_mosaic.version = 11 : i64} {
  func.func @_linear_kernel(%arg0: i32, %arg1: i32, %arg2: i32, %arg3: memref<8x36xbf16, #tpu.memory_space<vmem>>, %arg4: memref<36x32xbf16, #tpu.memory_space<vmem>>, %arg5: memref<1x32xf32, #tpu.memory_space<vmem>>, %arg6: memref<8x32xbf16, #tpu.memory_space<vmem>>, %arg7: memref<8x32xf32, #tpu.memory_space<vmem>>) attributes {dimension_semantics = [#tpu.dimension_semantics<parallel>, #tpu.dimension_semantics<parallel>, #tpu.dimension_semantics<arbitrary>], iteration_bounds = array<i64: 1, 1, 1>, scalar_prefetch = 0 : i64, scratch_operands = 1 : i64, tpu.core_type = #tpu.core_type<tc>, window_params = [{transform_indices = @transform_0, window_bounds = array<i64: 8, 36>}, {transform_indices = @transform_1, window_bounds = array<i64: 36, 32>}, {transform_indices = @transform_2, window_bounds = array<i64: 1, 32>}, {transform_indices = @transform_3, window_bounds = array<i64: 8, 32>}]} {
    %c0_i32 = arith.constant 0 : i32
    %0 = arith.cmpi eq, %arg2, %c0_i32 : i32
    %1 = arith.extui %0 : i1 to i32
    %c0_i32_0 = arith.constant 0 : i32
    %2 = arith.cmpi ne, %1, %c0_i32_0 : i32
    scf.if %2 {
      %cst_10 = arith.constant 0.000000e+00 : f32
      %12 = vector.broadcast %cst_10 : f32 to vector<8x32xf32>
      %c0_11 = arith.constant 0 : index
      %c0_12 = arith.constant 0 : index
      %13 = vector.load %arg7[%c0_11, %c0_12] : memref<8x32xf32, #tpu.memory_space<vmem>>, vector<8x32xf32>
      tpu.vector_store %arg7[%c0_11, %c0_12], %12 {strides = array<i32>} : memref<8x32xf32, #tpu.memory_space<vmem>>, vector<8x32xf32>,
    } else {
    }
    %c0 = arith.constant 0 : index
    %c0_1 = arith.constant 0 : index
    %3 = vector.load %arg7[%c0, %c0_1] : memref<8x32xf32, #tpu.memory_space<vmem>>, vector<8x32xf32>
    %c0_2 = arith.constant 0 : index
    %c0_3 = arith.constant 0 : index
    %4 = vector.load %arg3[%c0_2, %c0_3] : memref<8x36xbf16, #tpu.memory_space<vmem>>, vector<8x36xbf16>
    %c0_4 = arith.constant 0 : index
    %c0_5 = arith.constant 0 : index
    %5 = vector.load %arg4[%c0_4, %c0_5] : memref<36x32xbf16, #tpu.memory_space<vmem>>, vector<36x32xbf16>
    %cst = arith.constant dense<0.000000e+00> : vector<8x32xf32>
    %6 = tpu.matmul %4, %5, %cst {dimension_numbers = #tpu.dot_dimension_numbers<[1], [0], [0], [1], [0, 0, 1, 1], [], []>} : vector<8x36xbf16>, vector<36x32xbf16>, vector<8x32xf32> -> vector<8x32xf32>
    %7 = arith.addf %3, %6 : vector<8x32xf32>
    %c0_6 = arith.constant 0 : index
    %c0_7 = arith.constant 0 : index
    %8 = vector.load %arg7[%c0_6, %c0_7] : memref<8x32xf32, #tpu.memory_space<vmem>>, vector<8x32xf32>
    tpu.vector_store %arg7[%c0_6, %c0_7], %7 {strides = array<i32>} : memref<8x32xf32, #tpu.memory_space<vmem>>, vector<8x32xf32>,
    %c0_i32_8 = arith.constant 0 : i32
    %9 = arith.cmpi eq, %arg2, %c0_i32_8 : i32
    %10 = arith.extui %9 : i1 to i32
    %c0_i32_9 = arith.constant 0 : i32
    %11 = arith.cmpi ne, %10, %c0_i32_9 : i32
    scf.if %11 {
      %c0_10 = arith.constant 0 : index
      %c0_11 = arith.constant 0 : index
      %12 = vector.load %arg7[%c0_10, %c0_11] : memref<8x32xf32, #tpu.memory_space<vmem>>, vector<8x32xf32>
      %c0_12 = arith.constant 0 : index
      %c0_13 = arith.constant 0 : index
      %13 = vector.load %arg5[%c0_12, %c0_13] : memref<1x32xf32, #tpu.memory_space<vmem>>, vector<1x32xf32>
      %14 = vector.broadcast %13 : vector<1x32xf32> to vector<8x32xf32>
      %15 = arith.addf %12, %14 : vector<8x32xf32>
      %16 = arith.truncf %15 : vector<8x32xf32> to vector<8x32xbf16>
      %c0_14 = arith.constant 0 : index
      %c0_15 = arith.constant 0 : index
      %17 = vector.load %arg6[%c0_14, %c0_15] : memref<8x32xbf16, #tpu.memory_space<vmem>>, vector<8x32xbf16>
      tpu.vector_store %arg6[%c0_14, %c0_15], %16 {strides = array<i32>} : memref<8x32xbf16, #tpu.memory_space<vmem>>, vector<8x32xbf16>,
    } else {
    }
    return
  }
  func.func @transform_0(%arg0: i32, %arg1: i32, %arg2: i32) -> (i32, i32) {
    %c0_i32 = arith.constant 0 : i32
    return %arg0, %arg2 : i32, i32
  }
  func.func @transform_1(%arg0: i32, %arg1: i32, %arg2: i32) -> (i32, i32) {
    %c0_i32 = arith.constant 0 : i32
    return %arg2, %arg1 : i32, i32
  }
  func.func @transform_2(%arg0: i32, %arg1: i32, %arg2: i32) -> (i32, i32) {
    %c0_i32 = arith.constant 0 : i32
    %c0_i32_0 = arith.constant 0 : i32
    return %c0_i32, %arg1 : i32, i32
  }
  func.func @transform_3(%arg0: i32, %arg1: i32, %arg2: i32) -> (i32, i32) {
    %c0_i32 = arith.constant 0 : i32
    return %arg0, %arg1 : i32, i32
  }
}

module attributes {stable_mosaic.version = 11 : i64} {
  func.func @_layernorm_kernel(%arg0: i32, %arg1: memref<10x32xbf16, #tpu.memory_space<vmem>>, %arg2: memref<1x32xf32, #tpu.memory_space<vmem>>, %arg3: memref<1x32xf32, #tpu.memory_space<vmem>>, %arg4: memref<10x32xbf16, #tpu.memory_space<vmem>>) attributes {dimension_semantics = [#tpu.dimension_semantics<parallel>], iteration_bounds = array<i64: 1>, scalar_prefetch = 0 : i64, scratch_operands = 0 : i64, tpu.core_type = #tpu.core_type<tc>, window_params = [{transform_indices = @transform_0, window_bounds = array<i64: 10, 32>}, {pipeline_mode = #tpu.pipeline_mode<synchronous>, transform_indices = @transform_1, window_bounds = array<i64: 1, 32>}, {pipeline_mode = #tpu.pipeline_mode<synchronous>, transform_indices = @transform_2, window_bounds = array<i64: 1, 32>}, {transform_indices = @transform_3, window_bounds = array<i64: 10, 32>}]} {
    %c0 = arith.constant 0 : index
    %c0_0 = arith.constant 0 : index
    %0 = vector.load %arg1[%c0, %c0_0] : memref<10x32xbf16, #tpu.memory_space<vmem>>, vector<10x32xbf16>
    %1 = arith.extf %0 : vector<10x32xbf16> to vector<10x32xf32>
    %cst = arith.constant dense<0.000000e+00> : vector<10xf32>
    %2 = vector.multi_reduction <add>, %1, %cst [1] : vector<10x32xf32> to vector<10xf32>
    %3 = vector.shape_cast %2 : vector<10xf32> to vector<10x1xf32>
    %cst_1 = arith.constant 3.200000e+01 : f32
    %4 = vector.broadcast %cst_1 : f32 to vector<10x1xf32>
    %5 = arith.divf %3, %4 : vector<10x1xf32>
    %6 = vector.broadcast %5 : vector<10x1xf32> to vector<10x32xf32>
    %7 = arith.subf %1, %6 : vector<10x32xf32>
    %8 = arith.mulf %7, %7 : vector<10x32xf32>
    %cst_2 = arith.constant dense<0.000000e+00> : vector<10xf32>
    %9 = vector.multi_reduction <add>, %8, %cst_2 [1] : vector<10x32xf32> to vector<10xf32>
    %10 = vector.shape_cast %9 : vector<10xf32> to vector<10x1xf32>
    %cst_3 = arith.constant 3.200000e+01 : f32
    %11 = vector.broadcast %cst_3 : f32 to vector<10x1xf32>
    %12 = arith.divf %10, %11 : vector<10x1xf32>
    %cst_4 = arith.constant 9.99999997E-7 : f32
    %13 = vector.broadcast %cst_4 : f32 to vector<10x1xf32>
    %14 = arith.addf %12, %13 : vector<10x1xf32>
    %15 = math.rsqrt %14 : vector<10x1xf32>
    %16 = vector.broadcast %15 : vector<10x1xf32> to vector<10x32xf32>
    %17 = arith.mulf %7, %16 : vector<10x32xf32>
    %c0_5 = arith.constant 0 : index
    %c0_6 = arith.constant 0 : index
    %18 = vector.load %arg2[%c0_5, %c0_6] : memref<1x32xf32, #tpu.memory_space<vmem>>, vector<1x32xf32>
    %19 = vector.broadcast %18 : vector<1x32xf32> to vector<10x32xf32>
    %20 = arith.mulf %17, %19 : vector<10x32xf32>
    %c0_7 = arith.constant 0 : index
    %c0_8 = arith.constant 0 : index
    %21 = vector.load %arg3[%c0_7, %c0_8] : memref<1x32xf32, #tpu.memory_space<vmem>>, vector<1x32xf32>
    %22 = vector.broadcast %21 : vector<1x32xf32> to vector<10x32xf32>
    %23 = arith.addf %20, %22 : vector<10x32xf32>
    %24 = arith.truncf %23 : vector<10x32xf32> to vector<10x32xbf16>
    %c0_9 = arith.constant 0 : index
    %c0_10 = arith.constant 0 : index
    %25 = vector.load %arg4[%c0_9, %c0_10] : memref<10x32xbf16, #tpu.memory_space<vmem>>, vector<10x32xbf16>
    tpu.vector_store %arg4[%c0_9, %c0_10], %24 {strides = array<i32>} : memref<10x32xbf16, #tpu.memory_space<vmem>>, vector<10x32xbf16>,
    return
  }
  func.func @transform_0(%arg0: i32) -> (i32, i32) {
    %c0_i32 = arith.constant 0 : i32
    %c0_i32_0 = arith.constant 0 : i32
    return %arg0, %c0_i32 : i32, i32
  }
  func.func @transform_1(%arg0: i32) -> (i32, i32) {
    %c0_i32 = arith.constant 0 : i32
    %c0_i32_0 = arith.constant 0 : i32
    %c0_i32_1 = arith.constant 0 : i32
    return %c0_i32, %c0_i32_0 : i32, i32
  }
  func.func @transform_2(%arg0: i32) -> (i32, i32) {
    %c0_i32 = arith.constant 0 : i32
    %c0_i32_0 = arith.constant 0 : i32
    %c0_i32_1 = arith.constant 0 : i32
    return %c0_i32, %c0_i32_0 : i32, i32
  }
  func.func @transform_3(%arg0: i32) -> (i32, i32) {
    %c0_i32 = arith.constant 0 : i32
    %c0_i32_0 = arith.constant 0 : i32
    return %arg0, %c0_i32 : i32, i32
  }
}

module attributes {stable_mosaic.version = 11 : i64} {
  func.func @_knn_attn_kernel(%arg0: i32, %arg1: i32, %arg2: memref<1x5x96xbf16, #tpu.memory_space<vmem>>, %arg3: memref<1x5x96xbf16, #tpu.memory_space<vmem>>, %arg4: memref<1x5x32xbf16, #tpu.memory_space<vmem>>) attributes {dimension_semantics = [#tpu.dimension_semantics<parallel>, #tpu.dimension_semantics<parallel>], iteration_bounds = array<i64: 2, 1>, scalar_prefetch = 0 : i64, scratch_operands = 0 : i64, tpu.core_type = #tpu.core_type<tc>, window_params = [{transform_indices = @transform_0, window_bounds = array<i64: 1, 5, 96>}, {transform_indices = @transform_1, window_bounds = array<i64: 1, 5, 96>}, {transform_indices = @transform_2, window_bounds = array<i64: 1, 5, 32>}]} {
    %c0 = arith.constant 0 : index
    %c0_0 = arith.constant 0 : index
    %c0_1 = arith.constant 0 : index
    %0 = vector.load %arg2[%c0, %c0_0, %c0_1] : memref<1x5x96xbf16, #tpu.memory_space<vmem>>, vector<1x5x8xbf16>
    %1 = vector.shape_cast %0 : vector<1x5x8xbf16> to vector<5x8xbf16>
    %2 = arith.extf %1 : vector<5x8xbf16> to vector<5x8xf32>
    %cst = arith.constant 0.353553385 : f32
    %3 = vector.broadcast %cst : f32 to vector<5x8xf32>
    %4 = arith.mulf %2, %3 : vector<5x8xf32>
    %5 = arith.truncf %4 : vector<5x8xf32> to vector<5x8xbf16>
    %c0_2 = arith.constant 0 : index
    %c0_3 = arith.constant 0 : index
    %c32 = arith.constant 32 : index
    %6 = vector.load %arg3[%c0_2, %c0_3, %c32] : memref<1x5x96xbf16, #tpu.memory_space<vmem>>, vector<1x5x8xbf16>
    %7 = vector.shape_cast %6 : vector<1x5x8xbf16> to vector<5x8xbf16>
    %c0_4 = arith.constant 0 : index
    %c0_5 = arith.constant 0 : index
    %c64 = arith.constant 64 : index
    %8 = vector.load %arg3[%c0_4, %c0_5, %c64] : memref<1x5x96xbf16, #tpu.memory_space<vmem>>, vector<1x5x8xbf16>
    %9 = vector.shape_cast %8 : vector<1x5x8xbf16> to vector<5x8xbf16>
    %cst_6 = arith.constant dense<0.000000e+00> : vector<5x5xf32>
    %10 = tpu.matmul %5, %7, %cst_6 {dimension_numbers = #tpu.dot_dimension_numbers<[1], [1], [0], [0], [0, 0, 1, 0], [], []>} : vector<5x8xbf16>, vector<5x8xbf16>, vector<5x5xf32> -> vector<5x5xf32>
    %11 = tpu.bitcast %10 : vector<5x5xf32> -> vector<5x5xi32>
    %c0_i32 = arith.constant 0 : i32
    %12 = vector.broadcast %c0_i32 : i32 to vector<5x5xi32>
    %13 = arith.cmpi sge, %11, %12 : vector<5x5xi32>
    %c2147483647_i32 = arith.constant 2147483647 : i32
    %14 = vector.broadcast %c2147483647_i32 : i32 to vector<5x5xi32>
    %15 = arith.xori %11, %14 : vector<5x5xi32>
    %16 = arith.select %13, %11, %15 : vector<5x5xi1>, vector<5x5xi32>
    %cst_7 = arith.constant dense<2147483647> : vector<5xi32>
    %17 = vector.multi_reduction <minsi>, %16, %cst_7 [1] : vector<5x5xi32> to vector<5xi32>
    %18 = vector.shape_cast %17 : vector<5xi32> to vector<5x1xi32>
    %c1_i32 = arith.constant 1 : i32
    %19 = vector.broadcast %c1_i32 : i32 to vector<5x1xi32>
    %20 = arith.subi %18, %19 : vector<5x1xi32>
    %cst_8 = arith.constant dense<-2147483648> : vector<5xi32>
    %21 = vector.multi_reduction <maxsi>, %16, %cst_8 [1] : vector<5x5xi32> to vector<5xi32>
    %22 = vector.shape_cast %21 : vector<5xi32> to vector<5x1xi32>
    %c0_i32_9 = arith.constant 0 : i32
    %c32_i32 = arith.constant 32 : i32
    %23 = arith.addi %c0_i32_9, %c32_i32 : i32
    %c1_i32_10 = arith.constant 1 : i32
    %24:2 = scf.for %arg5 = %c0_i32_9 to %23 step %c1_i32_10 iter_args(%arg6 = %20, %arg7 = %22) -> (vector<5x1xi32>, vector<5x1xi32>)  : i32 {
      %c1_i32_87 = arith.constant 1 : i32
      %180 = vector.broadcast %c1_i32_87 : i32 to vector<5x1xi32>
      %181 = arith.shrsi %arg6, %180 : vector<5x1xi32>
      %c1_i32_88 = arith.constant 1 : i32
      %182 = vector.broadcast %c1_i32_88 : i32 to vector<5x1xi32>
      %183 = arith.shrsi %arg7, %182 : vector<5x1xi32>
      %184 = arith.addi %181, %183 : vector<5x1xi32>
      %185 = arith.andi %arg6, %arg7 : vector<5x1xi32>
      %c1_i32_89 = arith.constant 1 : i32
      %186 = vector.broadcast %c1_i32_89 : i32 to vector<5x1xi32>
      %187 = arith.andi %185, %186 : vector<5x1xi32>
      %188 = arith.addi %184, %187 : vector<5x1xi32>
      %189 = vector.broadcast %188 : vector<5x1xi32> to vector<5x5xi32>
      %190 = arith.cmpi sgt, %16, %189 : vector<5x5xi32>
      %191 = arith.extui %190 : vector<5x5xi1> to vector<5x5xi32>
      %cst_90 = arith.constant dense<0> : vector<5xi32>
      %192 = vector.multi_reduction <add>, %191, %cst_90 [1] : vector<5x5xi32> to vector<5xi32>
      %193 = vector.shape_cast %192 : vector<5xi32> to vector<5x1xi32>
      %c3_i32 = arith.constant 3 : i32
      %194 = vector.broadcast %c3_i32 : i32 to vector<5x1xi32>
      %195 = arith.cmpi sge, %193, %194 : vector<5x1xi32>
      %196 = arith.select %195, %188, %arg6 : vector<5x1xi1>, vector<5x1xi32>
      %197 = arith.select %195, %arg7, %188 : vector<5x1xi1>, vector<5x1xi32>
      scf.yield %196, %197 : vector<5x1xi32>, vector<5x1xi32>
    }
    %25 = vector.broadcast %24#1 : vector<5x1xi32> to vector<5x5xi32>
    %26 = arith.cmpi sge, %16, %25 : vector<5x5xi32>
    %cst_11 = arith.constant -1.000000e+30 : f32
    %27 = vector.broadcast %cst_11 : f32 to vector<5x5xf32>
    %28 = arith.select %26, %10, %27 : vector<5x5xi1>, vector<5x5xf32>
    %cst_12 = arith.constant dense<0xFF800000> : vector<5xf32>
    %29 = vector.multi_reduction <maximumf>, %28, %cst_12 [1] : vector<5x5xf32> to vector<5xf32>
    %30 = vector.shape_cast %29 : vector<5xf32> to vector<5x1xf32>
    %31 = vector.broadcast %30 : vector<5x1xf32> to vector<5x5xf32>
    %32 = arith.subf %28, %31 : vector<5x5xf32>
    %33 = math.exp %32 : vector<5x5xf32>
    %cst_13 = arith.constant dense<0.000000e+00> : vector<5xf32>
    %34 = vector.multi_reduction <add>, %33, %cst_13 [1] : vector<5x5xf32> to vector<5xf32>
    %35 = vector.shape_cast %34 : vector<5xf32> to vector<5x1xf32>
    %36 = tpu.reciprocal %35 {approx = true} : vector<5x1xf32> -> vector<5x1xf32>
    %37 = vector.broadcast %36 : vector<5x1xf32> to vector<5x5xf32>
    %38 = arith.mulf %33, %37 : vector<5x5xf32>
    %39 = arith.truncf %38 : vector<5x5xf32> to vector<5x5xbf16>
    %cst_14 = arith.constant dense<0.000000e+00> : vector<5x8xf32>
    %40 = tpu.matmul %39, %9, %cst_14 {dimension_numbers = #tpu.dot_dimension_numbers<[1], [0], [0], [1], [0, 0, 1, 1], [], []>} : vector<5x5xbf16>, vector<5x8xbf16>, vector<5x8xf32> -> vector<5x8xf32>
    %41 = arith.truncf %40 : vector<5x8xf32> to vector<5x8xbf16>
    %c0_15 = arith.constant 0 : index
    %c0_16 = arith.constant 0 : index
    %c0_17 = arith.constant 0 : index
    %42 = vector.load %arg4[%c0_15, %c0_16, %c0_17] : memref<1x5x32xbf16, #tpu.memory_space<vmem>>, vector<1x5x8xbf16>
    %43 = vector.shape_cast %42 : vector<1x5x8xbf16> to vector<5x8xbf16>
    %44 = vector.shape_cast %41 : vector<5x8xbf16> to vector<1x5x8xbf16>
    tpu.vector_store %arg4[%c0_15, %c0_16, %c0_17], %44 {strides = array<i32>} : memref<1x5x32xbf16, #tpu.memory_space<vmem>>, vector<1x5x8xbf16>,
    %c0_18 = arith.constant 0 : index
    %c0_19 = arith.constant 0 : index
    %c8 = arith.constant 8 : index
    %45 = vector.load %arg2[%c0_18, %c0_19, %c8] : memref<1x5x96xbf16, #tpu.memory_space<vmem>>, vector<1x5x8xbf16>
    %46 = vector.shape_cast %45 : vector<1x5x8xbf16> to vector<5x8xbf16>
    %47 = arith.extf %46 : vector<5x8xbf16> to vector<5x8xf32>
    %cst_20 = arith.constant 0.353553385 : f32
    %48 = vector.broadcast %cst_20 : f32 to vector<5x8xf32>
    %49 = arith.mulf %47, %48 : vector<5x8xf32>
    %50 = arith.truncf %49 : vector<5x8xf32> to vector<5x8xbf16>
    %c0_21 = arith.constant 0 : index
    %c0_22 = arith.constant 0 : index
    %c40 = arith.constant 40 : index
    %51 = vector.load %arg3[%c0_21, %c0_22, %c40] : memref<1x5x96xbf16, #tpu.memory_space<vmem>>, vector<1x5x8xbf16>
    %52 = vector.shape_cast %51 : vector<1x5x8xbf16> to vector<5x8xbf16>
    %c0_23 = arith.constant 0 : index
    %c0_24 = arith.constant 0 : index
    %c72 = arith.constant 72 : index
    %53 = vector.load %arg3[%c0_23, %c0_24, %c72] : memref<1x5x96xbf16, #tpu.memory_space<vmem>>, vector<1x5x8xbf16>
    %54 = vector.shape_cast %53 : vector<1x5x8xbf16> to vector<5x8xbf16>
    %cst_25 = arith.constant dense<0.000000e+00> : vector<5x5xf32>
    %55 = tpu.matmul %50, %52, %cst_25 {dimension_numbers = #tpu.dot_dimension_numbers<[1], [1], [0], [0], [0, 0, 1, 0], [], []>} : vector<5x8xbf16>, vector<5x8xbf16>, vector<5x5xf32> -> vector<5x5xf32>
    %56 = tpu.bitcast %55 : vector<5x5xf32> -> vector<5x5xi32>
    %c0_i32_26 = arith.constant 0 : i32
    %57 = vector.broadcast %c0_i32_26 : i32 to vector<5x5xi32>
    %58 = arith.cmpi sge, %56, %57 : vector<5x5xi32>
    %c2147483647_i32_27 = arith.constant 2147483647 : i32
    %59 = vector.broadcast %c2147483647_i32_27 : i32 to vector<5x5xi32>
    %60 = arith.xori %56, %59 : vector<5x5xi32>
    %61 = arith.select %58, %56, %60 : vector<5x5xi1>, vector<5x5xi32>
    %cst_28 = arith.constant dense<2147483647> : vector<5xi32>
    %62 = vector.multi_reduction <minsi>, %61, %cst_28 [1] : vector<5x5xi32> to vector<5xi32>
    %63 = vector.shape_cast %62 : vector<5xi32> to vector<5x1xi32>
    %c1_i32_29 = arith.constant 1 : i32
    %64 = vector.broadcast %c1_i32_29 : i32 to vector<5x1xi32>
    %65 = arith.subi %63, %64 : vector<5x1xi32>
    %cst_30 = arith.constant dense<-2147483648> : vector<5xi32>
    %66 = vector.multi_reduction <maxsi>, %61, %cst_30 [1] : vector<5x5xi32> to vector<5xi32>
    %67 = vector.shape_cast %66 : vector<5xi32> to vector<5x1xi32>
    %c0_i32_31 = arith.constant 0 : i32
    %c32_i32_32 = arith.constant 32 : i32
    %68 = arith.addi %c0_i32_31, %c32_i32_32 : i32
    %c1_i32_33 = arith.constant 1 : i32
    %69:2 = scf.for %arg5 = %c0_i32_31 to %68 step %c1_i32_33 iter_args(%arg6 = %65, %arg7 = %67) -> (vector<5x1xi32>, vector<5x1xi32>)  : i32 {
      %c1_i32_87 = arith.constant 1 : i32
      %180 = vector.broadcast %c1_i32_87 : i32 to vector<5x1xi32>
      %181 = arith.shrsi %arg6, %180 : vector<5x1xi32>
      %c1_i32_88 = arith.constant 1 : i32
      %182 = vector.broadcast %c1_i32_88 : i32 to vector<5x1xi32>
      %183 = arith.shrsi %arg7, %182 : vector<5x1xi32>
      %184 = arith.addi %181, %183 : vector<5x1xi32>
      %185 = arith.andi %arg6, %arg7 : vector<5x1xi32>
      %c1_i32_89 = arith.constant 1 : i32
      %186 = vector.broadcast %c1_i32_89 : i32 to vector<5x1xi32>
      %187 = arith.andi %185, %186 : vector<5x1xi32>
      %188 = arith.addi %184, %187 : vector<5x1xi32>
      %189 = vector.broadcast %188 : vector<5x1xi32> to vector<5x5xi32>
      %190 = arith.cmpi sgt, %61, %189 : vector<5x5xi32>
      %191 = arith.extui %190 : vector<5x5xi1> to vector<5x5xi32>
      %cst_90 = arith.constant dense<0> : vector<5xi32>
      %192 = vector.multi_reduction <add>, %191, %cst_90 [1] : vector<5x5xi32> to vector<5xi32>
      %193 = vector.shape_cast %192 : vector<5xi32> to vector<5x1xi32>
      %c3_i32 = arith.constant 3 : i32
      %194 = vector.broadcast %c3_i32 : i32 to vector<5x1xi32>
      %195 = arith.cmpi sge, %193, %194 : vector<5x1xi32>
      %196 = arith.select %195, %188, %arg6 : vector<5x1xi1>, vector<5x1xi32>
      %197 = arith.select %195, %arg7, %188 : vector<5x1xi1>, vector<5x1xi32>
      scf.yield %196, %197 : vector<5x1xi32>, vector<5x1xi32>
    }
    %70 = vector.broadcast %69#1 : vector<5x1xi32> to vector<5x5xi32>
    %71 = arith.cmpi sge, %61, %70 : vector<5x5xi32>
    %cst_34 = arith.constant -1.000000e+30 : f32
    %72 = vector.broadcast %cst_34 : f32 to vector<5x5xf32>
    %73 = arith.select %71, %55, %72 : vector<5x5xi1>, vector<5x5xf32>
    %cst_35 = arith.constant dense<0xFF800000> : vector<5xf32>
    %74 = vector.multi_reduction <maximumf>, %73, %cst_35 [1] : vector<5x5xf32> to vector<5xf32>
    %75 = vector.shape_cast %74 : vector<5xf32> to vector<5x1xf32>
    %76 = vector.broadcast %75 : vector<5x1xf32> to vector<5x5xf32>
    %77 = arith.subf %73, %76 : vector<5x5xf32>
    %78 = math.exp %77 : vector<5x5xf32>
    %cst_36 = arith.constant dense<0.000000e+00> : vector<5xf32>
    %79 = vector.multi_reduction <add>, %78, %cst_36 [1] : vector<5x5xf32> to vector<5xf32>
    %80 = vector.shape_cast %79 : vector<5xf32> to vector<5x1xf32>
    %81 = tpu.reciprocal %80 {approx = true} : vector<5x1xf32> -> vector<5x1xf32>
    %82 = vector.broadcast %81 : vector<5x1xf32> to vector<5x5xf32>
    %83 = arith.mulf %78, %82 : vector<5x5xf32>
    %84 = arith.truncf %83 : vector<5x5xf32> to vector<5x5xbf16>
    %cst_37 = arith.constant dense<0.000000e+00> : vector<5x8xf32>
    %85 = tpu.matmul %84, %54, %cst_37 {dimension_numbers = #tpu.dot_dimension_numbers<[1], [0], [0], [1], [0, 0, 1, 1], [], []>} : vector<5x5xbf16>, vector<5x8xbf16>, vector<5x8xf32> -> vector<5x8xf32>
    %86 = arith.truncf %85 : vector<5x8xf32> to vector<5x8xbf16>
    %c0_38 = arith.constant 0 : index
    %c0_39 = arith.constant 0 : index
    %c8_40 = arith.constant 8 : index
    %87 = vector.load %arg4[%c0_38, %c0_39, %c8_40] : memref<1x5x32xbf16, #tpu.memory_space<vmem>>, vector<1x5x8xbf16>
    %88 = vector.shape_cast %87 : vector<1x5x8xbf16> to vector<5x8xbf16>
    %89 = vector.shape_cast %86 : vector<5x8xbf16> to vector<1x5x8xbf16>
    tpu.vector_store %arg4[%c0_38, %c0_39, %c8_40], %89 {strides = array<i32>} : memref<1x5x32xbf16, #tpu.memory_space<vmem>>, vector<1x5x8xbf16>,
    %c0_41 = arith.constant 0 : index
    %c0_42 = arith.constant 0 : index
    %c16 = arith.constant 16 : index
    %90 = vector.load %arg2[%c0_41, %c0_42, %c16] : memref<1x5x96xbf16, #tpu.memory_space<vmem>>, vector<1x5x8xbf16>
    %91 = vector.shape_cast %90 : vector<1x5x8xbf16> to vector<5x8xbf16>
    %92 = arith.extf %91 : vector<5x8xbf16> to vector<5x8xf32>
    %cst_43 = arith.constant 0.353553385 : f32
    %93 = vector.broadcast %cst_43 : f32 to vector<5x8xf32>
    %94 = arith.mulf %92, %93 : vector<5x8xf32>
    %95 = arith.truncf %94 : vector<5x8xf32> to vector<5x8xbf16>
    %c0_44 = arith.constant 0 : index
    %c0_45 = arith.constant 0 : index
    %c48 = arith.constant 48 : index
    %96 = vector.load %arg3[%c0_44, %c0_45, %c48] : memref<1x5x96xbf16, #tpu.memory_space<vmem>>, vector<1x5x8xbf16>
    %97 = vector.shape_cast %96 : vector<1x5x8xbf16> to vector<5x8xbf16>
    %c0_46 = arith.constant 0 : index
    %c0_47 = arith.constant 0 : index
    %c80 = arith.constant 80 : index
    %98 = vector.load %arg3[%c0_46, %c0_47, %c80] : memref<1x5x96xbf16, #tpu.memory_space<vmem>>, vector<1x5x8xbf16>
    %99 = vector.shape_cast %98 : vector<1x5x8xbf16> to vector<5x8xbf16>
    %cst_48 = arith.constant dense<0.000000e+00> : vector<5x5xf32>
    %100 = tpu.matmul %95, %97, %cst_48 {dimension_numbers = #tpu.dot_dimension_numbers<[1], [1], [0], [0], [0, 0, 1, 0], [], []>} : vector<5x8xbf16>, vector<5x8xbf16>, vector<5x5xf32> -> vector<5x5xf32>
    %101 = tpu.bitcast %100 : vector<5x5xf32> -> vector<5x5xi32>
    %c0_i32_49 = arith.constant 0 : i32
    %102 = vector.broadcast %c0_i32_49 : i32 to vector<5x5xi32>
    %103 = arith.cmpi sge, %101, %102 : vector<5x5xi32>
    %c2147483647_i32_50 = arith.constant 2147483647 : i32
    %104 = vector.broadcast %c2147483647_i32_50 : i32 to vector<5x5xi32>
    %105 = arith.xori %101, %104 : vector<5x5xi32>
    %106 = arith.select %103, %101, %105 : vector<5x5xi1>, vector<5x5xi32>
    %cst_51 = arith.constant dense<2147483647> : vector<5xi32>
    %107 = vector.multi_reduction <minsi>, %106, %cst_51 [1] : vector<5x5xi32> to vector<5xi32>
    %108 = vector.shape_cast %107 : vector<5xi32> to vector<5x1xi32>
    %c1_i32_52 = arith.constant 1 : i32
    %109 = vector.broadcast %c1_i32_52 : i32 to vector<5x1xi32>
    %110 = arith.subi %108, %109 : vector<5x1xi32>
    %cst_53 = arith.constant dense<-2147483648> : vector<5xi32>
    %111 = vector.multi_reduction <maxsi>, %106, %cst_53 [1] : vector<5x5xi32> to vector<5xi32>
    %112 = vector.shape_cast %111 : vector<5xi32> to vector<5x1xi32>
    %c0_i32_54 = arith.constant 0 : i32
    %c32_i32_55 = arith.constant 32 : i32
    %113 = arith.addi %c0_i32_54, %c32_i32_55 : i32
    %c1_i32_56 = arith.constant 1 : i32
    %114:2 = scf.for %arg5 = %c0_i32_54 to %113 step %c1_i32_56 iter_args(%arg6 = %110, %arg7 = %112) -> (vector<5x1xi32>, vector<5x1xi32>)  : i32 {
      %c1_i32_87 = arith.constant 1 : i32
      %180 = vector.broadcast %c1_i32_87 : i32 to vector<5x1xi32>
      %181 = arith.shrsi %arg6, %180 : vector<5x1xi32>
      %c1_i32_88 = arith.constant 1 : i32
      %182 = vector.broadcast %c1_i32_88 : i32 to vector<5x1xi32>
      %183 = arith.shrsi %arg7, %182 : vector<5x1xi32>
      %184 = arith.addi %181, %183 : vector<5x1xi32>
      %185 = arith.andi %arg6, %arg7 : vector<5x1xi32>
      %c1_i32_89 = arith.constant 1 : i32
      %186 = vector.broadcast %c1_i32_89 : i32 to vector<5x1xi32>
      %187 = arith.andi %185, %186 : vector<5x1xi32>
      %188 = arith.addi %184, %187 : vector<5x1xi32>
      %189 = vector.broadcast %188 : vector<5x1xi32> to vector<5x5xi32>
      %190 = arith.cmpi sgt, %106, %189 : vector<5x5xi32>
      %191 = arith.extui %190 : vector<5x5xi1> to vector<5x5xi32>
      %cst_90 = arith.constant dense<0> : vector<5xi32>
      %192 = vector.multi_reduction <add>, %191, %cst_90 [1] : vector<5x5xi32> to vector<5xi32>
      %193 = vector.shape_cast %192 : vector<5xi32> to vector<5x1xi32>
      %c3_i32 = arith.constant 3 : i32
      %194 = vector.broadcast %c3_i32 : i32 to vector<5x1xi32>
      %195 = arith.cmpi sge, %193, %194 : vector<5x1xi32>
      %196 = arith.select %195, %188, %arg6 : vector<5x1xi1>, vector<5x1xi32>
      %197 = arith.select %195, %arg7, %188 : vector<5x1xi1>, vector<5x1xi32>
      scf.yield %196, %197 : vector<5x1xi32>, vector<5x1xi32>
    }
    %115 = vector.broadcast %114#1 : vector<5x1xi32> to vector<5x5xi32>
    %116 = arith.cmpi sge, %106, %115 : vector<5x5xi32>
    %cst_57 = arith.constant -1.000000e+30 : f32
    %117 = vector.broadcast %cst_57 : f32 to vector<5x5xf32>
    %118 = arith.select %116, %100, %117 : vector<5x5xi1>, vector<5x5xf32>
    %cst_58 = arith.constant dense<0xFF800000> : vector<5xf32>
    %119 = vector.multi_reduction <maximumf>, %118, %cst_58 [1] : vector<5x5xf32> to vector<5xf32>
    %120 = vector.shape_cast %119 : vector<5xf32> to vector<5x1xf32>
    %121 = vector.broadcast %120 : vector<5x1xf32> to vector<5x5xf32>
    %122 = arith.subf %118, %121 : vector<5x5xf32>
    %123 = math.exp %122 : vector<5x5xf32>
    %cst_59 = arith.constant dense<0.000000e+00> : vector<5xf32>
    %124 = vector.multi_reduction <add>, %123, %cst_59 [1] : vector<5x5xf32> to vector<5xf32>
    %125 = vector.shape_cast %124 : vector<5xf32> to vector<5x1xf32>
    %126 = tpu.reciprocal %125 {approx = true} : vector<5x1xf32> -> vector<5x1xf32>
    %127 = vector.broadcast %126 : vector<5x1xf32> to vector<5x5xf32>
    %128 = arith.mulf %123, %127 : vector<5x5xf32>
    %129 = arith.truncf %128 : vector<5x5xf32> to vector<5x5xbf16>
    %cst_60 = arith.constant dense<0.000000e+00> : vector<5x8xf32>
    %130 = tpu.matmul %129, %99, %cst_60 {dimension_numbers = #tpu.dot_dimension_numbers<[1], [0], [0], [1], [0, 0, 1, 1], [], []>} : vector<5x5xbf16>, vector<5x8xbf16>, vector<5x8xf32> -> vector<5x8xf32>
    %131 = arith.truncf %130 : vector<5x8xf32> to vector<5x8xbf16>
    %c0_61 = arith.constant 0 : index
    %c0_62 = arith.constant 0 : index
    %c16_63 = arith.constant 16 : index
    %132 = vector.load %arg4[%c0_61, %c0_62, %c16_63] : memref<1x5x32xbf16, #tpu.memory_space<vmem>>, vector<1x5x8xbf16>
    %133 = vector.shape_cast %132 : vector<1x5x8xbf16> to vector<5x8xbf16>
    %134 = vector.shape_cast %131 : vector<5x8xbf16> to vector<1x5x8xbf16>
    tpu.vector_store %arg4[%c0_61, %c0_62, %c16_63], %134 {strides = array<i32>} : memref<1x5x32xbf16, #tpu.memory_space<vmem>>, vector<1x5x8xbf16>,
    %c0_64 = arith.constant 0 : index
    %c0_65 = arith.constant 0 : index
    %c24 = arith.constant 24 : index
    %135 = vector.load %arg2[%c0_64, %c0_65, %c24] : memref<1x5x96xbf16, #tpu.memory_space<vmem>>, vector<1x5x8xbf16>
    %136 = vector.shape_cast %135 : vector<1x5x8xbf16> to vector<5x8xbf16>
    %137 = arith.extf %136 : vector<5x8xbf16> to vector<5x8xf32>
    %cst_66 = arith.constant 0.353553385 : f32
    %138 = vector.broadcast %cst_66 : f32 to vector<5x8xf32>
    %139 = arith.mulf %137, %138 : vector<5x8xf32>
    %140 = arith.truncf %139 : vector<5x8xf32> to vector<5x8xbf16>
    %c0_67 = arith.constant 0 : index
    %c0_68 = arith.constant 0 : index
    %c56 = arith.constant 56 : index
    %141 = vector.load %arg3[%c0_67, %c0_68, %c56] : memref<1x5x96xbf16, #tpu.memory_space<vmem>>, vector<1x5x8xbf16>
    %142 = vector.shape_cast %141 : vector<1x5x8xbf16> to vector<5x8xbf16>
    %c0_69 = arith.constant 0 : index
    %c0_70 = arith.constant 0 : index
    %c88 = arith.constant 88 : index
    %143 = vector.load %arg3[%c0_69, %c0_70, %c88] : memref<1x5x96xbf16, #tpu.memory_space<vmem>>, vector<1x5x8xbf16>
    %144 = vector.shape_cast %143 : vector<1x5x8xbf16> to vector<5x8xbf16>
    %cst_71 = arith.constant dense<0.000000e+00> : vector<5x5xf32>
    %145 = tpu.matmul %140, %142, %cst_71 {dimension_numbers = #tpu.dot_dimension_numbers<[1], [1], [0], [0], [0, 0, 1, 0], [], []>} : vector<5x8xbf16>, vector<5x8xbf16>, vector<5x5xf32> -> vector<5x5xf32>
    %146 = tpu.bitcast %145 : vector<5x5xf32> -> vector<5x5xi32>
    %c0_i32_72 = arith.constant 0 : i32
    %147 = vector.broadcast %c0_i32_72 : i32 to vector<5x5xi32>
    %148 = arith.cmpi sge, %146, %147 : vector<5x5xi32>
    %c2147483647_i32_73 = arith.constant 2147483647 : i32
    %149 = vector.broadcast %c2147483647_i32_73 : i32 to vector<5x5xi32>
    %150 = arith.xori %146, %149 : vector<5x5xi32>
    %151 = arith.select %148, %146, %150 : vector<5x5xi1>, vector<5x5xi32>
    %cst_74 = arith.constant dense<2147483647> : vector<5xi32>
    %152 = vector.multi_reduction <minsi>, %151, %cst_74 [1] : vector<5x5xi32> to vector<5xi32>
    %153 = vector.shape_cast %152 : vector<5xi32> to vector<5x1xi32>
    %c1_i32_75 = arith.constant 1 : i32
    %154 = vector.broadcast %c1_i32_75 : i32 to vector<5x1xi32>
    %155 = arith.subi %153, %154 : vector<5x1xi32>
    %cst_76 = arith.constant dense<-2147483648> : vector<5xi32>
    %156 = vector.multi_reduction <maxsi>, %151, %cst_76 [1] : vector<5x5xi32> to vector<5xi32>
    %157 = vector.shape_cast %156 : vector<5xi32> to vector<5x1xi32>
    %c0_i32_77 = arith.constant 0 : i32
    %c32_i32_78 = arith.constant 32 : i32
    %158 = arith.addi %c0_i32_77, %c32_i32_78 : i32
    %c1_i32_79 = arith.constant 1 : i32
    %159:2 = scf.for %arg5 = %c0_i32_77 to %158 step %c1_i32_79 iter_args(%arg6 = %155, %arg7 = %157) -> (vector<5x1xi32>, vector<5x1xi32>)  : i32 {
      %c1_i32_87 = arith.constant 1 : i32
      %180 = vector.broadcast %c1_i32_87 : i32 to vector<5x1xi32>
      %181 = arith.shrsi %arg6, %180 : vector<5x1xi32>
      %c1_i32_88 = arith.constant 1 : i32
      %182 = vector.broadcast %c1_i32_88 : i32 to vector<5x1xi32>
      %183 = arith.shrsi %arg7, %182 : vector<5x1xi32>
      %184 = arith.addi %181, %183 : vector<5x1xi32>
      %185 = arith.andi %arg6, %arg7 : vector<5x1xi32>
      %c1_i32_89 = arith.constant 1 : i32
      %186 = vector.broadcast %c1_i32_89 : i32 to vector<5x1xi32>
      %187 = arith.andi %185, %186 : vector<5x1xi32>
      %188 = arith.addi %184, %187 : vector<5x1xi32>
      %189 = vector.broadcast %188 : vector<5x1xi32> to vector<5x5xi32>
      %190 = arith.cmpi sgt, %151, %189 : vector<5x5xi32>
      %191 = arith.extui %190 : vector<5x5xi1> to vector<5x5xi32>
      %cst_90 = arith.constant dense<0> : vector<5xi32>
      %192 = vector.multi_reduction <add>, %191, %cst_90 [1] : vector<5x5xi32> to vector<5xi32>
      %193 = vector.shape_cast %192 : vector<5xi32> to vector<5x1xi32>
      %c3_i32 = arith.constant 3 : i32
      %194 = vector.broadcast %c3_i32 : i32 to vector<5x1xi32>
      %195 = arith.cmpi sge, %193, %194 : vector<5x1xi32>
      %196 = arith.select %195, %188, %arg6 : vector<5x1xi1>, vector<5x1xi32>
      %197 = arith.select %195, %arg7, %188 : vector<5x1xi1>, vector<5x1xi32>
      scf.yield %196, %197 : vector<5x1xi32>, vector<5x1xi32>
    }
    %160 = vector.broadcast %159#1 : vector<5x1xi32> to vector<5x5xi32>
    %161 = arith.cmpi sge, %151, %160 : vector<5x5xi32>
    %cst_80 = arith.constant -1.000000e+30 : f32
    %162 = vector.broadcast %cst_80 : f32 to vector<5x5xf32>
    %163 = arith.select %161, %145, %162 : vector<5x5xi1>, vector<5x5xf32>
    %cst_81 = arith.constant dense<0xFF800000> : vector<5xf32>
    %164 = vector.multi_reduction <maximumf>, %163, %cst_81 [1] : vector<5x5xf32> to vector<5xf32>
    %165 = vector.shape_cast %164 : vector<5xf32> to vector<5x1xf32>
    %166 = vector.broadcast %165 : vector<5x1xf32> to vector<5x5xf32>
    %167 = arith.subf %163, %166 : vector<5x5xf32>
    %168 = math.exp %167 : vector<5x5xf32>
    %cst_82 = arith.constant dense<0.000000e+00> : vector<5xf32>
    %169 = vector.multi_reduction <add>, %168, %cst_82 [1] : vector<5x5xf32> to vector<5xf32>
    %170 = vector.shape_cast %169 : vector<5xf32> to vector<5x1xf32>
    %171 = tpu.reciprocal %170 {approx = true} : vector<5x1xf32> -> vector<5x1xf32>
    %172 = vector.broadcast %171 : vector<5x1xf32> to vector<5x5xf32>
    %173 = arith.mulf %168, %172 : vector<5x5xf32>
    %174 = arith.truncf %173 : vector<5x5xf32> to vector<5x5xbf16>
    %cst_83 = arith.constant dense<0.000000e+00> : vector<5x8xf32>
    %175 = tpu.matmul %174, %144, %cst_83 {dimension_numbers = #tpu.dot_dimension_numbers<[1], [0], [0], [1], [0, 0, 1, 1], [], []>} : vector<5x5xbf16>, vector<5x8xbf16>, vector<5x8xf32> -> vector<5x8xf32>
    %176 = arith.truncf %175 : vector<5x8xf32> to vector<5x8xbf16>
    %c0_84 = arith.constant 0 : index
    %c0_85 = arith.constant 0 : index
    %c24_86 = arith.constant 24 : index
    %177 = vector.load %arg4[%c0_84, %c0_85, %c24_86] : memref<1x5x32xbf16, #tpu.memory_space<vmem>>, vector<1x5x8xbf16>
    %178 = vector.shape_cast %177 : vector<1x5x8xbf16> to vector<5x8xbf16>
    %179 = vector.shape_cast %176 : vector<5x8xbf16> to vector<1x5x8xbf16>
    tpu.vector_store %arg4[%c0_84, %c0_85, %c24_86], %179 {strides = array<i32>} : memref<1x5x32xbf16, #tpu.memory_space<vmem>>, vector<1x5x8xbf16>,
    return
  }
  func.func @transform_0(%arg0: i32, %arg1: i32) -> (i32, i32, i32) {
    %c0_i32 = arith.constant 0 : i32
    %c0_i32_0 = arith.constant 0 : i32
    return %arg0, %arg1, %c0_i32 : i32, i32, i32
  }
  func.func @transform_1(%arg0: i32, %arg1: i32) -> (i32, i32, i32) {
    %c0_i32 = arith.constant 0 : i32
    %c0_i32_0 = arith.constant 0 : i32
    %c0_i32_1 = arith.constant 0 : i32
    return %arg0, %c0_i32, %c0_i32_0 : i32, i32, i32
  }
  func.func @transform_2(%arg0: i32, %arg1: i32) -> (i32, i32, i32) {
    %c0_i32 = arith.constant 0 : i32
    %c0_i32_0 = arith.constant 0 : i32
    return %arg0, %arg1, %c0_i32 : i32, i32, i32
  }
}

module attributes {stable_mosaic.version = 11 : i64} {
  func.func @_linear_kernel(%arg0: i32, %arg1: i32, %arg2: i32, %arg3: memref<10x32xbf16, #tpu.memory_space<vmem>>, %arg4: memref<32x96xbf16, #tpu.memory_space<vmem>>, %arg5: memref<1x96xf32, #tpu.memory_space<vmem>>, %arg6: memref<10x96xbf16, #tpu.memory_space<vmem>>, %arg7: memref<10x96xf32, #tpu.memory_space<vmem>>) attributes {dimension_semantics = [#tpu.dimension_semantics<parallel>, #tpu.dimension_semantics<parallel>, #tpu.dimension_semantics<arbitrary>], iteration_bounds = array<i64: 1, 1, 1>, scalar_prefetch = 0 : i64, scratch_operands = 1 : i64, tpu.core_type = #tpu.core_type<tc>, window_params = [{transform_indices = @transform_0, window_bounds = array<i64: 10, 32>}, {transform_indices = @transform_1, window_bounds = array<i64: 32, 96>}, {transform_indices = @transform_2, window_bounds = array<i64: 1, 96>}, {transform_indices = @transform_3, window_bounds = array<i64: 10, 96>}]} {
    %c0_i32 = arith.constant 0 : i32
    %0 = arith.cmpi eq, %arg2, %c0_i32 : i32
    %1 = arith.extui %0 : i1 to i32
    %c0_i32_0 = arith.constant 0 : i32
    %2 = arith.cmpi ne, %1, %c0_i32_0 : i32
    scf.if %2 {
      %cst_10 = arith.constant 0.000000e+00 : f32
      %12 = vector.broadcast %cst_10 : f32 to vector<10x96xf32>
      %c0_11 = arith.constant 0 : index
      %c0_12 = arith.constant 0 : index
      %13 = vector.load %arg7[%c0_11, %c0_12] : memref<10x96xf32, #tpu.memory_space<vmem>>, vector<10x96xf32>
      tpu.vector_store %arg7[%c0_11, %c0_12], %12 {strides = array<i32>} : memref<10x96xf32, #tpu.memory_space<vmem>>, vector<10x96xf32>,
    } else {
    }
    %c0 = arith.constant 0 : index
    %c0_1 = arith.constant 0 : index
    %3 = vector.load %arg7[%c0, %c0_1] : memref<10x96xf32, #tpu.memory_space<vmem>>, vector<10x96xf32>
    %c0_2 = arith.constant 0 : index
    %c0_3 = arith.constant 0 : index
    %4 = vector.load %arg3[%c0_2, %c0_3] : memref<10x32xbf16, #tpu.memory_space<vmem>>, vector<10x32xbf16>
    %c0_4 = arith.constant 0 : index
    %c0_5 = arith.constant 0 : index
    %5 = vector.load %arg4[%c0_4, %c0_5] : memref<32x96xbf16, #tpu.memory_space<vmem>>, vector<32x96xbf16>
    %cst = arith.constant dense<0.000000e+00> : vector<10x96xf32>
    %6 = tpu.matmul %4, %5, %cst {dimension_numbers = #tpu.dot_dimension_numbers<[1], [0], [0], [1], [0, 0, 1, 1], [], []>} : vector<10x32xbf16>, vector<32x96xbf16>, vector<10x96xf32> -> vector<10x96xf32>
    %7 = arith.addf %3, %6 : vector<10x96xf32>
    %c0_6 = arith.constant 0 : index
    %c0_7 = arith.constant 0 : index
    %8 = vector.load %arg7[%c0_6, %c0_7] : memref<10x96xf32, #tpu.memory_space<vmem>>, vector<10x96xf32>
    tpu.vector_store %arg7[%c0_6, %c0_7], %7 {strides = array<i32>} : memref<10x96xf32, #tpu.memory_space<vmem>>, vector<10x96xf32>,
    %c0_i32_8 = arith.constant 0 : i32
    %9 = arith.cmpi eq, %arg2, %c0_i32_8 : i32
    %10 = arith.extui %9 : i1 to i32
    %c0_i32_9 = arith.constant 0 : i32
    %11 = arith.cmpi ne, %10, %c0_i32_9 : i32
    scf.if %11 {
      %c0_10 = arith.constant 0 : index
      %c0_11 = arith.constant 0 : index
      %12 = vector.load %arg7[%c0_10, %c0_11] : memref<10x96xf32, #tpu.memory_space<vmem>>, vector<10x96xf32>
      %c0_12 = arith.constant 0 : index
      %c0_13 = arith.constant 0 : index
      %13 = vector.load %arg5[%c0_12, %c0_13] : memref<1x96xf32, #tpu.memory_space<vmem>>, vector<1x96xf32>
      %14 = vector.broadcast %13 : vector<1x96xf32> to vector<10x96xf32>
      %15 = arith.addf %12, %14 : vector<10x96xf32>
      %16 = arith.truncf %15 : vector<10x96xf32> to vector<10x96xbf16>
      %c0_14 = arith.constant 0 : index
      %c0_15 = arith.constant 0 : index
      %17 = vector.load %arg6[%c0_14, %c0_15] : memref<10x96xbf16, #tpu.memory_space<vmem>>, vector<10x96xbf16>
      tpu.vector_store %arg6[%c0_14, %c0_15], %16 {strides = array<i32>} : memref<10x96xbf16, #tpu.memory_space<vmem>>, vector<10x96xbf16>,
    } else {
    }
    return
  }
  func.func @transform_0(%arg0: i32, %arg1: i32, %arg2: i32) -> (i32, i32) {
    %c0_i32 = arith.constant 0 : i32
    return %arg0, %arg2 : i32, i32
  }
  func.func @transform_1(%arg0: i32, %arg1: i32, %arg2: i32) -> (i32, i32) {
    %c0_i32 = arith.constant 0 : i32
    return %arg2, %arg1 : i32, i32
  }
  func.func @transform_2(%arg0: i32, %arg1: i32, %arg2: i32) -> (i32, i32) {
    %c0_i32 = arith.constant 0 : i32
    %c0_i32_0 = arith.constant 0 : i32
    return %c0_i32, %arg1 : i32, i32
  }
  func.func @transform_3(%arg0: i32, %arg1: i32, %arg2: i32) -> (i32, i32) {
    %c0_i32 = arith.constant 0 : i32
    return %arg0, %arg1 : i32, i32
  }
}

module attributes {stable_mosaic.version = 11 : i64} {
  func.func @_linear_kernel(%arg0: i32, %arg1: i32, %arg2: i32, %arg3: memref<10x32xbf16, #tpu.memory_space<vmem>>, %arg4: memref<32x128xbf16, #tpu.memory_space<vmem>>, %arg5: memref<1x128xf32, #tpu.memory_space<vmem>>, %arg6: memref<10x128xbf16, #tpu.memory_space<vmem>>, %arg7: memref<10x128xf32, #tpu.memory_space<vmem>>) attributes {dimension_semantics = [#tpu.dimension_semantics<parallel>, #tpu.dimension_semantics<parallel>, #tpu.dimension_semantics<arbitrary>], iteration_bounds = array<i64: 1, 1, 1>, scalar_prefetch = 0 : i64, scratch_operands = 1 : i64, tpu.core_type = #tpu.core_type<tc>, window_params = [{transform_indices = @transform_0, window_bounds = array<i64: 10, 32>}, {transform_indices = @transform_1, window_bounds = array<i64: 32, 128>}, {transform_indices = @transform_2, window_bounds = array<i64: 1, 128>}, {transform_indices = @transform_3, window_bounds = array<i64: 10, 128>}]} {
    %c0_i32 = arith.constant 0 : i32
    %0 = arith.cmpi eq, %arg2, %c0_i32 : i32
    %1 = arith.extui %0 : i1 to i32
    %c0_i32_0 = arith.constant 0 : i32
    %2 = arith.cmpi ne, %1, %c0_i32_0 : i32
    scf.if %2 {
      %cst_10 = arith.constant 0.000000e+00 : f32
      %12 = vector.broadcast %cst_10 : f32 to vector<10x128xf32>
      %c0_11 = arith.constant 0 : index
      %c0_12 = arith.constant 0 : index
      %13 = vector.load %arg7[%c0_11, %c0_12] : memref<10x128xf32, #tpu.memory_space<vmem>>, vector<10x128xf32>
      tpu.vector_store %arg7[%c0_11, %c0_12], %12 {strides = array<i32>} : memref<10x128xf32, #tpu.memory_space<vmem>>, vector<10x128xf32>,
    } else {
    }
    %c0 = arith.constant 0 : index
    %c0_1 = arith.constant 0 : index
    %3 = vector.load %arg7[%c0, %c0_1] : memref<10x128xf32, #tpu.memory_space<vmem>>, vector<10x128xf32>
    %c0_2 = arith.constant 0 : index
    %c0_3 = arith.constant 0 : index
    %4 = vector.load %arg3[%c0_2, %c0_3] : memref<10x32xbf16, #tpu.memory_space<vmem>>, vector<10x32xbf16>
    %c0_4 = arith.constant 0 : index
    %c0_5 = arith.constant 0 : index
    %5 = vector.load %arg4[%c0_4, %c0_5] : memref<32x128xbf16, #tpu.memory_space<vmem>>, vector<32x128xbf16>
    %cst = arith.constant dense<0.000000e+00> : vector<10x128xf32>
    %6 = tpu.matmul %4, %5, %cst {dimension_numbers = #tpu.dot_dimension_numbers<[1], [0], [0], [1], [0, 0, 1, 1], [], []>} : vector<10x32xbf16>, vector<32x128xbf16>, vector<10x128xf32> -> vector<10x128xf32>
    %7 = arith.addf %3, %6 : vector<10x128xf32>
    %c0_6 = arith.constant 0 : index
    %c0_7 = arith.constant 0 : index
    %8 = vector.load %arg7[%c0_6, %c0_7] : memref<10x128xf32, #tpu.memory_space<vmem>>, vector<10x128xf32>
    tpu.vector_store %arg7[%c0_6, %c0_7], %7 {strides = array<i32>} : memref<10x128xf32, #tpu.memory_space<vmem>>, vector<10x128xf32>,
    %c0_i32_8 = arith.constant 0 : i32
    %9 = arith.cmpi eq, %arg2, %c0_i32_8 : i32
    %10 = arith.extui %9 : i1 to i32
    %c0_i32_9 = arith.constant 0 : i32
    %11 = arith.cmpi ne, %10, %c0_i32_9 : i32
    scf.if %11 {
      %c0_10 = arith.constant 0 : index
      %c0_11 = arith.constant 0 : index
      %12 = vector.load %arg7[%c0_10, %c0_11] : memref<10x128xf32, #tpu.memory_space<vmem>>, vector<10x128xf32>
      %c0_12 = arith.constant 0 : index
      %c0_13 = arith.constant 0 : index
      %13 = vector.load %arg5[%c0_12, %c0_13] : memref<1x128xf32, #tpu.memory_space<vmem>>, vector<1x128xf32>
      %14 = vector.broadcast %13 : vector<1x128xf32> to vector<10x128xf32>
      %15 = arith.addf %12, %14 : vector<10x128xf32>
      %cst_14 = arith.constant 5.000000e-01 : f32
      %16 = vector.broadcast %cst_14 : f32 to vector<10x128xf32>
      %17 = arith.mulf %16, %15 : vector<10x128xf32>
      %cst_15 = arith.constant 0.707106769 : f32
      %18 = vector.broadcast %cst_15 : f32 to vector<10x128xf32>
      %19 = arith.mulf %15, %18 : vector<10x128xf32>
      %cst_16 = arith.constant 0.000000e+00 : f32
      %20 = vector.broadcast %cst_16 : f32 to vector<10x128xf32>
      %21 = arith.cmpf oge, %19, %20 : vector<10x128xf32>
      %cst_17 = arith.constant 1.000000e+00 : f32
      %cst_18 = arith.constant -1.000000e+00 : f32
      %22 = vector.broadcast %cst_17 : f32 to vector<10x128xf32>
      %23 = vector.broadcast %cst_18 : f32 to vector<10x128xf32>
      %24 = arith.select %21, %22, %23 : vector<10x128xi1>, vector<10x128xf32>
      %25 = math.absf %19 : vector<10x128xf32>
      %cst_19 = arith.constant 0.327591091 : f32
      %26 = vector.broadcast %cst_19 : f32 to vector<10x128xf32>
      %27 = arith.mulf %26, %25 : vector<10x128xf32>
      %cst_20 = arith.constant 1.000000e+00 : f32
      %28 = vector.broadcast %cst_20 : f32 to vector<10x128xf32>
      %29 = arith.addf %28, %27 : vector<10x128xf32>
      %cst_21 = arith.constant 1.000000e+00 : f32
      %30 = vector.broadcast %cst_21 : f32 to vector<10x128xf32>
      %31 = arith.divf %30, %29 : vector<10x128xf32>
      %cst_22 = arith.constant 1.06140542 : f32
      %32 = vector.broadcast %cst_22 : f32 to vector<10x128xf32>
      %33 = arith.mulf %32, %31 : vector<10x128xf32>
      %cst_23 = arith.constant -1.45315206 : f32
      %34 = vector.broadcast %cst_23 : f32 to vector<10x128xf32>
      %35 = arith.addf %33, %34 : vector<10x128xf32>
      %36 = arith.mulf %35, %31 : vector<10x128xf32>
      %cst_24 = arith.constant 1.42141378 : f32
      %37 = vector.broadcast %cst_24 : f32 to vector<10x128xf32>
      %38 = arith.addf %36, %37 : vector<10x128xf32>
      %39 = arith.mulf %38, %31 : vector<10x128xf32>
      %cst_25 = arith.constant -0.284496725 : f32
      %40 = vector.broadcast %cst_25 : f32 to vector<10x128xf32>
      %41 = arith.addf %39, %40 : vector<10x128xf32>
      %42 = arith.mulf %41, %31 : vector<10x128xf32>
      %cst_26 = arith.constant 0.254829586 : f32
      %43 = vector.broadcast %cst_26 : f32 to vector<10x128xf32>
      %44 = arith.addf %42, %43 : vector<10x128xf32>
      %45 = arith.mulf %44, %31 : vector<10x128xf32>
      %cst_27 = arith.constant 0.000000e+00 : f32
      %46 = vector.broadcast %cst_27 : f32 to vector<10x128xf32>
      %47 = arith.subf %46, %25 : vector<10x128xf32>
      %48 = arith.mulf %47, %25 : vector<10x128xf32>
      %49 = math.exp %48 : vector<10x128xf32>
      %50 = arith.mulf %45, %49 : vector<10x128xf32>
      %cst_28 = arith.constant 1.000000e+00 : f32
      %51 = vector.broadcast %cst_28 : f32 to vector<10x128xf32>
      %52 = arith.subf %51, %50 : vector<10x128xf32>
      %53 = arith.mulf %24, %52 : vector<10x128xf32>
      %cst_29 = arith.constant 1.000000e+00 : f32
      %54 = vector.broadcast %cst_29 : f32 to vector<10x128xf32>
      %55 = arith.addf %54, %53 : vector<10x128xf32>
      %56 = arith.mulf %17, %55 : vector<10x128xf32>
      %57 = arith.truncf %56 : vector<10x128xf32> to vector<10x128xbf16>
      %c0_30 = arith.constant 0 : index
      %c0_31 = arith.constant 0 : index
      %58 = vector.load %arg6[%c0_30, %c0_31] : memref<10x128xbf16, #tpu.memory_space<vmem>>, vector<10x128xbf16>
      tpu.vector_store %arg6[%c0_30, %c0_31], %57 {strides = array<i32>} : memref<10x128xbf16, #tpu.memory_space<vmem>>, vector<10x128xbf16>,
    } else {
    }
    return
  }
  func.func @transform_0(%arg0: i32, %arg1: i32, %arg2: i32) -> (i32, i32) {
    %c0_i32 = arith.constant 0 : i32
    return %arg0, %arg2 : i32, i32
  }
  func.func @transform_1(%arg0: i32, %arg1: i32, %arg2: i32) -> (i32, i32) {
    %c0_i32 = arith.constant 0 : i32
    return %arg2, %arg1 : i32, i32
  }
  func.func @transform_2(%arg0: i32, %arg1: i32, %arg2: i32) -> (i32, i32) {
    %c0_i32 = arith.constant 0 : i32
    %c0_i32_0 = arith.constant 0 : i32
    return %c0_i32, %arg1 : i32, i32
  }
  func.func @transform_3(%arg0: i32, %arg1: i32, %arg2: i32) -> (i32, i32) {
    %c0_i32 = arith.constant 0 : i32
    return %arg0, %arg1 : i32, i32
  }
}

module attributes {stable_mosaic.version = 11 : i64} {
  func.func @_linear_kernel(%arg0: i32, %arg1: i32, %arg2: i32, %arg3: memref<10x128xbf16, #tpu.memory_space<vmem>>, %arg4: memref<128x32xbf16, #tpu.memory_space<vmem>>, %arg5: memref<1x32xf32, #tpu.memory_space<vmem>>, %arg6: memref<10x32xbf16, #tpu.memory_space<vmem>>, %arg7: memref<10x32xbf16, #tpu.memory_space<vmem>>, %arg8: memref<10x32xf32, #tpu.memory_space<vmem>>) attributes {dimension_semantics = [#tpu.dimension_semantics<parallel>, #tpu.dimension_semantics<parallel>, #tpu.dimension_semantics<arbitrary>], iteration_bounds = array<i64: 1, 1, 1>, scalar_prefetch = 0 : i64, scratch_operands = 1 : i64, tpu.core_type = #tpu.core_type<tc>, window_params = [{transform_indices = @transform_0, window_bounds = array<i64: 10, 128>}, {transform_indices = @transform_1, window_bounds = array<i64: 128, 32>}, {transform_indices = @transform_2, window_bounds = array<i64: 1, 32>}, {transform_indices = @transform_3, window_bounds = array<i64: 10, 32>}, {transform_indices = @transform_4, window_bounds = array<i64: 10, 32>}]} {
    %c0_i32 = arith.constant 0 : i32
    %0 = arith.cmpi eq, %arg2, %c0_i32 : i32
    %1 = arith.extui %0 : i1 to i32
    %c0_i32_0 = arith.constant 0 : i32
    %2 = arith.cmpi ne, %1, %c0_i32_0 : i32
    scf.if %2 {
      %cst_10 = arith.constant 0.000000e+00 : f32
      %12 = vector.broadcast %cst_10 : f32 to vector<10x32xf32>
      %c0_11 = arith.constant 0 : index
      %c0_12 = arith.constant 0 : index
      %13 = vector.load %arg8[%c0_11, %c0_12] : memref<10x32xf32, #tpu.memory_space<vmem>>, vector<10x32xf32>
      tpu.vector_store %arg8[%c0_11, %c0_12], %12 {strides = array<i32>} : memref<10x32xf32, #tpu.memory_space<vmem>>, vector<10x32xf32>,
    } else {
    }
    %c0 = arith.constant 0 : index
    %c0_1 = arith.constant 0 : index
    %3 = vector.load %arg8[%c0, %c0_1] : memref<10x32xf32, #tpu.memory_space<vmem>>, vector<10x32xf32>
    %c0_2 = arith.constant 0 : index
    %c0_3 = arith.constant 0 : index
    %4 = vector.load %arg3[%c0_2, %c0_3] : memref<10x128xbf16, #tpu.memory_space<vmem>>, vector<10x128xbf16>
    %c0_4 = arith.constant 0 : index
    %c0_5 = arith.constant 0 : index
    %5 = vector.load %arg4[%c0_4, %c0_5] : memref<128x32xbf16, #tpu.memory_space<vmem>>, vector<128x32xbf16>
    %cst = arith.constant dense<0.000000e+00> : vector<10x32xf32>
    %6 = tpu.matmul %4, %5, %cst {dimension_numbers = #tpu.dot_dimension_numbers<[1], [0], [0], [1], [0, 0, 1, 1], [], []>} : vector<10x128xbf16>, vector<128x32xbf16>, vector<10x32xf32> -> vector<10x32xf32>
    %7 = arith.addf %3, %6 : vector<10x32xf32>
    %c0_6 = arith.constant 0 : index
    %c0_7 = arith.constant 0 : index
    %8 = vector.load %arg8[%c0_6, %c0_7] : memref<10x32xf32, #tpu.memory_space<vmem>>, vector<10x32xf32>
    tpu.vector_store %arg8[%c0_6, %c0_7], %7 {strides = array<i32>} : memref<10x32xf32, #tpu.memory_space<vmem>>, vector<10x32xf32>,
    %c0_i32_8 = arith.constant 0 : i32
    %9 = arith.cmpi eq, %arg2, %c0_i32_8 : i32
    %10 = arith.extui %9 : i1 to i32
    %c0_i32_9 = arith.constant 0 : i32
    %11 = arith.cmpi ne, %10, %c0_i32_9 : i32
    scf.if %11 {
      %c0_10 = arith.constant 0 : index
      %c0_11 = arith.constant 0 : index
      %12 = vector.load %arg8[%c0_10, %c0_11] : memref<10x32xf32, #tpu.memory_space<vmem>>, vector<10x32xf32>
      %c0_12 = arith.constant 0 : index
      %c0_13 = arith.constant 0 : index
      %13 = vector.load %arg5[%c0_12, %c0_13] : memref<1x32xf32, #tpu.memory_space<vmem>>, vector<1x32xf32>
      %14 = vector.broadcast %13 : vector<1x32xf32> to vector<10x32xf32>
      %15 = arith.addf %12, %14 : vector<10x32xf32>
      %c0_14 = arith.constant 0 : index
      %c0_15 = arith.constant 0 : index
      %16 = vector.load %arg6[%c0_14, %c0_15] : memref<10x32xbf16, #tpu.memory_space<vmem>>, vector<10x32xbf16>
      %17 = arith.extf %16 : vector<10x32xbf16> to vector<10x32xf32>
      %18 = arith.addf %15, %17 : vector<10x32xf32>
      %19 = arith.truncf %18 : vector<10x32xf32> to vector<10x32xbf16>
      %c0_16 = arith.constant 0 : index
      %c0_17 = arith.constant 0 : index
      %20 = vector.load %arg7[%c0_16, %c0_17] : memref<10x32xbf16, #tpu.memory_space<vmem>>, vector<10x32xbf16>
      tpu.vector_store %arg7[%c0_16, %c0_17], %19 {strides = array<i32>} : memref<10x32xbf16, #tpu.memory_space<vmem>>, vector<10x32xbf16>,
    } else {
    }
    return
  }
  func.func @transform_0(%arg0: i32, %arg1: i32, %arg2: i32) -> (i32, i32) {
    %c0_i32 = arith.constant 0 : i32
    return %arg0, %arg2 : i32, i32
  }
  func.func @transform_1(%arg0: i32, %arg1: i32, %arg2: i32) -> (i32, i32) {
    %c0_i32 = arith.constant 0 : i32
    return %arg2, %arg1 : i32, i32
  }
  func.func @transform_2(%arg0: i32, %arg1: i32, %arg2: i32) -> (i32, i32) {
    %c0_i32 = arith.constant 0 : i32
    %c0_i32_0 = arith.constant 0 : i32
    return %c0_i32, %arg1 : i32, i32
  }
  func.func @transform_3(%arg0: i32, %arg1: i32, %arg2: i32) -> (i32, i32) {
    %c0_i32 = arith.constant 0 : i32
    return %arg0, %arg1 : i32, i32
  }
  func.func @transform_4(%arg0: i32, %arg1: i32, %arg2: i32) -> (i32, i32) {
    %c0_i32 = arith.constant 0 : i32
    return %arg0, %arg1 : i32, i32
  }
}

module attributes {stable_mosaic.version = 11 : i64} {
  func.func @_linear_kernel(%arg0: i32, %arg1: i32, %arg2: i32, %arg3: memref<10x32xbf16, #tpu.memory_space<vmem>>, %arg4: memref<32x32xbf16, #tpu.memory_space<vmem>>, %arg5: memref<1x32xf32, #tpu.memory_space<vmem>>, %arg6: memref<10x32xbf16, #tpu.memory_space<vmem>>, %arg7: memref<10x32xbf16, #tpu.memory_space<vmem>>, %arg8: memref<10x32xf32, #tpu.memory_space<vmem>>) attributes {dimension_semantics = [#tpu.dimension_semantics<parallel>, #tpu.dimension_semantics<parallel>, #tpu.dimension_semantics<arbitrary>], iteration_bounds = array<i64: 1, 1, 1>, scalar_prefetch = 0 : i64, scratch_operands = 1 : i64, tpu.core_type = #tpu.core_type<tc>, window_params = [{transform_indices = @transform_0, window_bounds = array<i64: 10, 32>}, {transform_indices = @transform_1, window_bounds = array<i64: 32, 32>}, {transform_indices = @transform_2, window_bounds = array<i64: 1, 32>}, {transform_indices = @transform_3, window_bounds = array<i64: 10, 32>}, {transform_indices = @transform_4, window_bounds = array<i64: 10, 32>}]} {
    %c0_i32 = arith.constant 0 : i32
    %0 = arith.cmpi eq, %arg2, %c0_i32 : i32
    %1 = arith.extui %0 : i1 to i32
    %c0_i32_0 = arith.constant 0 : i32
    %2 = arith.cmpi ne, %1, %c0_i32_0 : i32
    scf.if %2 {
      %cst_10 = arith.constant 0.000000e+00 : f32
      %12 = vector.broadcast %cst_10 : f32 to vector<10x32xf32>
      %c0_11 = arith.constant 0 : index
      %c0_12 = arith.constant 0 : index
      %13 = vector.load %arg8[%c0_11, %c0_12] : memref<10x32xf32, #tpu.memory_space<vmem>>, vector<10x32xf32>
      tpu.vector_store %arg8[%c0_11, %c0_12], %12 {strides = array<i32>} : memref<10x32xf32, #tpu.memory_space<vmem>>, vector<10x32xf32>,
    } else {
    }
    %c0 = arith.constant 0 : index
    %c0_1 = arith.constant 0 : index
    %3 = vector.load %arg8[%c0, %c0_1] : memref<10x32xf32, #tpu.memory_space<vmem>>, vector<10x32xf32>
    %c0_2 = arith.constant 0 : index
    %c0_3 = arith.constant 0 : index
    %4 = vector.load %arg3[%c0_2, %c0_3] : memref<10x32xbf16, #tpu.memory_space<vmem>>, vector<10x32xbf16>
    %c0_4 = arith.constant 0 : index
    %c0_5 = arith.constant 0 : index
    %5 = vector.load %arg4[%c0_4, %c0_5] : memref<32x32xbf16, #tpu.memory_space<vmem>>, vector<32x32xbf16>
    %cst = arith.constant dense<0.000000e+00> : vector<10x32xf32>
    %6 = tpu.matmul %4, %5, %cst {dimension_numbers = #tpu.dot_dimension_numbers<[1], [0], [0], [1], [0, 0, 1, 1], [], []>} : vector<10x32xbf16>, vector<32x32xbf16>, vector<10x32xf32> -> vector<10x32xf32>
    %7 = arith.addf %3, %6 : vector<10x32xf32>
    %c0_6 = arith.constant 0 : index
    %c0_7 = arith.constant 0 : index
    %8 = vector.load %arg8[%c0_6, %c0_7] : memref<10x32xf32, #tpu.memory_space<vmem>>, vector<10x32xf32>
    tpu.vector_store %arg8[%c0_6, %c0_7], %7 {strides = array<i32>} : memref<10x32xf32, #tpu.memory_space<vmem>>, vector<10x32xf32>,
    %c0_i32_8 = arith.constant 0 : i32
    %9 = arith.cmpi eq, %arg2, %c0_i32_8 : i32
    %10 = arith.extui %9 : i1 to i32
    %c0_i32_9 = arith.constant 0 : i32
    %11 = arith.cmpi ne, %10, %c0_i32_9 : i32
    scf.if %11 {
      %c0_10 = arith.constant 0 : index
      %c0_11 = arith.constant 0 : index
      %12 = vector.load %arg8[%c0_10, %c0_11] : memref<10x32xf32, #tpu.memory_space<vmem>>, vector<10x32xf32>
      %c0_12 = arith.constant 0 : index
      %c0_13 = arith.constant 0 : index
      %13 = vector.load %arg5[%c0_12, %c0_13] : memref<1x32xf32, #tpu.memory_space<vmem>>, vector<1x32xf32>
      %14 = vector.broadcast %13 : vector<1x32xf32> to vector<10x32xf32>
      %15 = arith.addf %12, %14 : vector<10x32xf32>
      %c0_14 = arith.constant 0 : index
      %c0_15 = arith.constant 0 : index
      %16 = vector.load %arg6[%c0_14, %c0_15] : memref<10x32xbf16, #tpu.memory_space<vmem>>, vector<10x32xbf16>
      %17 = arith.extf %16 : vector<10x32xbf16> to vector<10x32xf32>
      %18 = arith.addf %15, %17 : vector<10x32xf32>
      %19 = arith.truncf %18 : vector<10x32xf32> to vector<10x32xbf16>
      %c0_16 = arith.constant 0 : index
      %c0_17 = arith.constant 0 : index
      %20 = vector.load %arg7[%c0_16, %c0_17] : memref<10x32xbf16, #tpu.memory_space<vmem>>, vector<10x32xbf16>
      tpu.vector_store %arg7[%c0_16, %c0_17], %19 {strides = array<i32>} : memref<10x32xbf16, #tpu.memory_space<vmem>>, vector<10x32xbf16>,
    } else {
    }
    return
  }
  func.func @transform_0(%arg0: i32, %arg1: i32, %arg2: i32) -> (i32, i32) {
    %c0_i32 = arith.constant 0 : i32
    return %arg0, %arg2 : i32, i32
  }
  func.func @transform_1(%arg0: i32, %arg1: i32, %arg2: i32) -> (i32, i32) {
    %c0_i32 = arith.constant 0 : i32
    return %arg2, %arg1 : i32, i32
  }
  func.func @transform_2(%arg0: i32, %arg1: i32, %arg2: i32) -> (i32, i32) {
    %c0_i32 = arith.constant 0 : i32
    %c0_i32_0 = arith.constant 0 : i32
    return %c0_i32, %arg1 : i32, i32
  }
  func.func @transform_3(%arg0: i32, %arg1: i32, %arg2: i32) -> (i32, i32) {
    %c0_i32 = arith.constant 0 : i32
    return %arg0, %arg1 : i32, i32
  }
  func.func @transform_4(%arg0: i32, %arg1: i32, %arg2: i32) -> (i32, i32) {
    %c0_i32 = arith.constant 0 : i32
    return %arg0, %arg1 : i32, i32
  }
}

module attributes {stable_mosaic.version = 11 : i64} {
  func.func @_linear_kernel(%arg0: i32, %arg1: i32, %arg2: i32, %arg3: memref<2x32xbf16, #tpu.memory_space<vmem>>, %arg4: memref<32x1xbf16, #tpu.memory_space<vmem>>, %arg5: memref<1x1xf32, #tpu.memory_space<vmem>>, %arg6: memref<2x1xf32, #tpu.memory_space<vmem>>, %arg7: memref<2x1xf32, #tpu.memory_space<vmem>>) attributes {dimension_semantics = [#tpu.dimension_semantics<parallel>, #tpu.dimension_semantics<parallel>, #tpu.dimension_semantics<arbitrary>], iteration_bounds = array<i64: 1, 1, 1>, scalar_prefetch = 0 : i64, scratch_operands = 1 : i64, tpu.core_type = #tpu.core_type<tc>, window_params = [{transform_indices = @transform_0, window_bounds = array<i64: 2, 32>}, {transform_indices = @transform_1, window_bounds = array<i64: 32, 1>}, {transform_indices = @transform_2, window_bounds = array<i64: 1, 1>}, {transform_indices = @transform_3, window_bounds = array<i64: 2, 1>}]} {
    %c0_i32 = arith.constant 0 : i32
    %0 = arith.cmpi eq, %arg2, %c0_i32 : i32
    %1 = arith.extui %0 : i1 to i32
    %c0_i32_0 = arith.constant 0 : i32
    %2 = arith.cmpi ne, %1, %c0_i32_0 : i32
    scf.if %2 {
      %cst_10 = arith.constant 0.000000e+00 : f32
      %12 = vector.broadcast %cst_10 : f32 to vector<2x1xf32>
      %c0_11 = arith.constant 0 : index
      %c0_12 = arith.constant 0 : index
      %13 = vector.load %arg7[%c0_11, %c0_12] : memref<2x1xf32, #tpu.memory_space<vmem>>, vector<2x1xf32>
      tpu.vector_store %arg7[%c0_11, %c0_12], %12 {strides = array<i32>} : memref<2x1xf32, #tpu.memory_space<vmem>>, vector<2x1xf32>,
    } else {
    }
    %c0 = arith.constant 0 : index
    %c0_1 = arith.constant 0 : index
    %3 = vector.load %arg7[%c0, %c0_1] : memref<2x1xf32, #tpu.memory_space<vmem>>, vector<2x1xf32>
    %c0_2 = arith.constant 0 : index
    %c0_3 = arith.constant 0 : index
    %4 = vector.load %arg3[%c0_2, %c0_3] : memref<2x32xbf16, #tpu.memory_space<vmem>>, vector<2x32xbf16>
    %c0_4 = arith.constant 0 : index
    %c0_5 = arith.constant 0 : index
    %5 = vector.load %arg4[%c0_4, %c0_5] : memref<32x1xbf16, #tpu.memory_space<vmem>>, vector<32x1xbf16>
    %cst = arith.constant dense<0.000000e+00> : vector<2x1xf32>
    %6 = tpu.matmul %4, %5, %cst {dimension_numbers = #tpu.dot_dimension_numbers<[1], [0], [0], [1], [0, 0, 1, 1], [], []>} : vector<2x32xbf16>, vector<32x1xbf16>, vector<2x1xf32> -> vector<2x1xf32>
    %7 = arith.addf %3, %6 : vector<2x1xf32>
    %c0_6 = arith.constant 0 : index
    %c0_7 = arith.constant 0 : index
    %8 = vector.load %arg7[%c0_6, %c0_7] : memref<2x1xf32, #tpu.memory_space<vmem>>, vector<2x1xf32>
    tpu.vector_store %arg7[%c0_6, %c0_7], %7 {strides = array<i32>} : memref<2x1xf32, #tpu.memory_space<vmem>>, vector<2x1xf32>,
    %c0_i32_8 = arith.constant 0 : i32
    %9 = arith.cmpi eq, %arg2, %c0_i32_8 : i32
    %10 = arith.extui %9 : i1 to i32
    %c0_i32_9 = arith.constant 0 : i32
    %11 = arith.cmpi ne, %10, %c0_i32_9 : i32
    scf.if %11 {
      %c0_10 = arith.constant 0 : index
      %c0_11 = arith.constant 0 : index
      %12 = vector.load %arg7[%c0_10, %c0_11] : memref<2x1xf32, #tpu.memory_space<vmem>>, vector<2x1xf32>
      %c0_12 = arith.constant 0 : index
      %c0_13 = arith.constant 0 : index
      %13 = vector.load %arg5[%c0_12, %c0_13] : memref<1x1xf32, #tpu.memory_space<vmem>>, vector<1x1xf32>
      %14 = vector.broadcast %13 : vector<1x1xf32> to vector<2x1xf32>
      %15 = arith.addf %12, %14 : vector<2x1xf32>
      %c0_14 = arith.constant 0 : index
      %c0_15 = arith.constant 0 : index
      %16 = vector.load %arg6[%c0_14, %c0_15] : memref<2x1xf32, #tpu.memory_space<vmem>>, vector<2x1xf32>
      tpu.vector_store %arg6[%c0_14, %c0_15], %15 {strides = array<i32>} : memref<2x1xf32, #tpu.memory_space<vmem>>, vector<2x1xf32>,
    } else {
    }
    return
  }
  func.func @transform_0(%arg0: i32, %arg1: i32, %arg2: i32) -> (i32, i32) {
    %c0_i32 = arith.constant 0 : i32
    return %arg0, %arg2 : i32, i32
  }
  func.func @transform_1(%arg0: i32, %arg1: i32, %arg2: i32) -> (i32, i32) {
    %c0_i32 = arith.constant 0 : i32
    return %arg2, %arg1 : i32, i32
  }
  func.func @transform_2(%arg0: i32, %arg1: i32, %arg2: i32) -> (i32, i32) {
    %c0_i32 = arith.constant 0 : i32
    %c0_i32_0 = arith.constant 0 : i32
    return %c0_i32, %arg1 : i32, i32
  }
  func.func @transform_3(%arg0: i32, %arg1: i32, %arg2: i32) -> (i32, i32) {
    %c0_i32 = arith.constant 0 : i32
    return %arg0, %arg1 : i32, i32
  }
}

</mosaic_0001>

<bundles_post_ra>
// kernel: vit_forward.17
= control target key start
LH: loop header
LB: loop body
LE: loop exit
PB: predicated region body
PF: predicated region fallthrough
CT: control target
= control target key end

     0   :  { %vm47_vm0 = vcmask 1041408   ;;  %v137_v0 = vmov 0.0   ;;  %vm138_vm1 = vmmov 0   ;;  %vm19_vm2 = vcmask 261120   ;;  %s177_s1 = inlined_call_operand.vmem [shape: bf16[36,32], index: 1, kind: input, shape index: {}]   ;;  %s178_s0 = inlined_call_operand.vmem [shape: bf16[8,36], index: 0, kind: input, shape index: {}]   ;;  %s179_s2 = inlined_call_operand.vmem [shape: f32[1,32], index: 2, kind: input, shape index: {}]   ;;  %s180_s3 = inlined_call_operand.vmem [shape: bf16[8,32], index: 3, kind: output, shape index: {}]  }
   0x1   :  { %122 = vmatprep.subr.bf16.mxu0 %v137_v0  ;;  %v134_v1 = vld [vmem:[%s177_s1 + $0x10] ss:$0 sps:$4 sm:$0x33]   ;;  %128 = vmatprep.mubr.msk.bf16.mxu0 %vm138_vm1, %v137_v0  ;;  %v135_v3 = vld [vmem:[%s177_s1 + $0x8] sm:$0xff]   ;;  %20 = vst.msk [vmem:[#allocation2] sm:$0xff] %vm19_vm2, %v137_v0  ;;  %v136_v4 = vld [vmem:[%s177_s1] sm:$0xff]  }
   0x2   :  { %v49_v2 = vsel %vm47_vm0, %v134_v1, 0  ;;  %v22_v5 = vld [vmem:[%s178_s0] sm:$0xf]  ;;  %vm43_vm3 = vcmask 293888   ;;  %vm107_vm4 = vcmask 257024  }
   0x3   :  { %123 = vmatpush3.bf16.msra.mxu0 %v49_v2  ;;  %v117_v12 = vld [vmem:[%s179_s2] ss:$0 sm:$0xff] }
   0x4   :  { %124 = vmatprep.subr.bf16.mxu0 %v137_v0 }
   0x7   :  { %125 = vmatpush3.bf16.msra.mxu0 %v135_v3 }
   0x8   :  { %126 = vmatprep.subr.bf16.mxu0 %v137_v0  ;;  %v21_v6 = vld [vmem:[#allocation2] sm:$0xff] }
   0xb   :  { %127 = vmatpush3.bf16.msra.mxu0 %v136_v4 }
   0xe   :  { %129 = vmatmul.mubr.msk.bf16.vlgmr.msra.gmra.mxu0 %vm43_vm3, %v22_v5 }
  0xce   :  { %v85_v7 = vpop.f32.mrf.mxu0 }
  0xcf   :  { %v91_v8 = vadd.f32 %v85_v7, %v21_v6 }
  0xd0   :  { %v130_v9 = vpop.f32.mrf.mxu0 }
  0xd1   :  { %93 = vst.msk [vmem:[#allocation2] sm:$0xff] %vm19_vm2, %v91_v8 }
  0xd2   :  { %v88_v10 = vpop.f32.mrf.mxu0 }
  0xd4   :  { %v131_v11 = vpop.f32.mrf.mxu0 }
  0xd8   :  { %v97_v13 = vld [vmem:[#allocation2] sm:$0xff] }
  0xd9   :  { %v105_v14 = vadd.f32 %v117_v12, %v97_v13 }
  0xdb   :  { %v106_v15 = vpack.c.bf16 %v105_v14, %v105_v14 }
  0xdd   :  { %108 = vst.msk [vmem:[%s180_s3] sm:$0xf] %vm107_vm4, %v106_v15 }

// kernel: vit_forward.19
= control target key start
LH: loop header
LB: loop body
LE: loop exit
PB: predicated region body
PF: predicated region fallthrough
CT: control target
= control target key end

     0   :  { %vm19_vm0 = vcmask 785408   ;;  %v154_v0 = vmov 0.0   ;;  %vm155_vm1 = vmmov 0   ;;  %vm48_vm2 = vcmask 261120   ;;  %s196_s1 = inlined_call_operand.vmem [shape: bf16[32,96], index: 1, kind: input, shape index: {}]   ;;  %s197_s0 = inlined_call_operand.vmem [shape: bf16[10,32], index: 0, kind: input, shape index: {}]   ;;  %s198_s2 = inlined_call_operand.vmem [shape: f32[1,96], index: 2, kind: input, shape index: {}]   ;;  %s199_s3 = inlined_call_operand.vmem [shape: bf16[10,96], index: 3, kind: output, shape index: {}]  }
   0x1   :  { %141 = vmatprep.subr.bf16.mxu0 %v154_v0  ;;  %v151_v1 = vld [vmem:[%s196_s1 + $0x8] sm:$0xff]   ;;  %145 = vmatprep.mubr.msk.bf16.mxu0 %vm155_vm1, %v154_v0  ;;  %20 = vst.msk [vmem:[#allocation2] sm:$0xff] %vm19_vm0, %v154_v0  ;;  %v152_v2 = vld [vmem:[%s196_s1] sm:$0xff]   ;;  %vm21_vm3 = vcmask 779264   ;;  %vm121_vm4 = vcmask 781312   ;;  %vm123_vm5 = vcmask 778240  }
   0x2   :  { %142 = vmatpush3.bf16.msra.mxu0 %v151_v1  ;;  %v153_v3 = vld [vmem:[%s197_s0] sm:$0x1f]   ;;  %22 = vst.msk [vmem:[#allocation2 + $0x8] sm:$0x3] %vm21_vm3, %v154_v0 }
   0x3   :  { %143 = vmatprep.subr.bf16.mxu0 %v154_v0  ;;  %v133_v12 = vld [vmem:[%s198_s2] ss:$0 sm:$0xff] }
   0x6   :  { %144 = vmatpush3.bf16.msra.mxu0 %v152_v2 }
   0x8   :  { %v23_v4 = vld [vmem:[#allocation2] sm:$0xff] }
   0x9   :  { %146 = vmatmul.mubr.msk.bf16.vlgmr.msra.gmra.mxu0 %vm48_vm2, %v153_v3  ;;  %v24_v8 = vld [vmem:[#allocation2 + $0x8] sm:$0x3] }
  0xc9   :  { %v86_v5 = vpop.f32.mrf.mxu0 }
  0xca   :  { %v93_v6 = vadd.f32 %v86_v5, %v23_v4 }
  0xcb   :  { %v147_v7 = vpop.f32.mrf.mxu0 }
  0xcc   :  { %96 = vst.msk [vmem:[#allocation2] sm:$0xff] %vm19_vm0, %v93_v6 }
  0xcd   :  { %v89_v9 = vpop.f32.mrf.mxu0 }
  0xce   :  { %v94_v10 = vadd.f32 %v89_v9, %v24_v8 }
  0xcf   :  { %v148_v11 = vpop.f32.mrf.mxu0 }
  0xd0   :  { %98 = vst.msk [vmem:[#allocation2 + $0x8] sm:$0x3] %vm21_vm3, %v94_v10 }
  0xd3   :  { %v102_v13 = vld [vmem:[#allocation2] sm:$0xff] }
  0xd4   :  { %v111_v14 = vadd.f32 %v133_v12, %v102_v13 }
  0xd6   :  { %v136_v15 = vpack.c.bf16 %v111_v14, %v111_v14 }
  0xd7   :  { %v103_v16 = vld [vmem:[#allocation2 + $0x8] sm:$0x3] }
  0xd8   :  { %122 = vst.msk [vmem:[%s199_s3] sm:$0xf] %vm121_vm4, %v136_v15  ;;  %v112_v17 = vadd.f32 %v133_v12, %v103_v16 }
  0xda   :  { %v137_v18 = vpack.c.bf16 %v112_v17, %v112_v17 }
  0xdc   :  { %124 = vst.msk [vmem:[%s199_s3 + $0x4] sm:$0x1] %vm123_vm5, %v137_v18 }

// kernel: vit_forward.18
= control target key start
LH: loop header
LB: loop body
LE: loop exit
PB: predicated region body
PF: predicated region fallthrough
CT: control target
= control target key end

     0   :  { %vm18_vm0 = vcmask 261120   ;;  %vm22_vm1 = vcmask 254976   ;;  %vm73_vm2 = vcmask 257024   ;;  %vm75_vm3 = vcmask 253952   ;;  %s131_s0 = inlined_call_operand.vmem [shape: bf16[10,32], index: 0, kind: input, shape index: {}]   ;;  %s132_s1 = inlined_call_operand.vmem [shape: f32[1,32], index: 1, kind: input, shape index: {}]   ;;  %s133_s2 = inlined_call_operand.vmem [shape: f32[1,32], index: 2, kind: input, shape index: {}]   ;;  %s134_s3 = inlined_call_operand.vmem [shape: bf16[10,32], index: 3, kind: output, shape index: {}]  }
   0x1   :  { %v14_v0 = vld [vmem:[%s131_s0] sm:$0xf]  ;;  %v15_v1 = vld [vmem:[%s131_s0 + $0x4] sm:$0x1] }
   0x2   :  { %v16_v2 = vunpack.c.l.bf16 %v14_v0  ;;  %v17_v3 = vunpack.c.l.bf16 %v15_v1  ;;  %v81_v23 = vld [vmem:[%s132_s1] ss:$0 sm:$0xff] }
   0x3   :  { %v82_v25 = vld [vmem:[%s133_s2] ss:$0 sm:$0xff] }
   0x4   :  { %v19_v4 = vsel %vm18_vm0, %v16_v2, 0.0  ;;  %v23_v5 = vsel %vm22_vm1, %v17_v3, 0.0 }
   0x5   :  { %20 = vadd.xlane.f32.xlu0 %v19_v4 }
   0x9   :  { %24 = vadd.xlane.f32.xlu0 %v23_v5 }
  0x8e   :  { %v21_v6 = vpop.xlane.xlu0 %20 }
  0x8f   :  { %v27_v7 = vmul.f32 0.03125, %v21_v6 }
  0x91   :  { %v29_v8 = vsub.f32 %v16_v2, %v27_v7 }
  0x92   :  { %v25_v9 = vpop.xlane.xlu0 %24 }
  0x93   :  { %v28_v10 = vmul.f32 0.03125, %v25_v9  ;;  %v31_v11 = vmul.f32 %v29_v8, %v29_v8 }
  0x95   :  { %v30_v12 = vsub.f32 %v17_v3, %v28_v10  ;;  %v33_v13 = vsel %vm18_vm0, %v31_v11, 0.0 }
  0x96   :  { %34 = vadd.xlane.f32.xlu1 %v33_v13 }
  0x97   :  { %v32_v14 = vmul.f32 %v30_v12, %v30_v12 }
  0x99   :  { %v36_v15 = vsel %vm22_vm1, %v32_v14, 0.0 }
  0x9a   :  { %37 = vadd.xlane.f32.xlu1 %v36_v15 }
 0x11f   :  { %v35_v16 = vpop.xlane.xlu1 %34 }
 0x120   :  { %v39_v17 = vmul.f32 0.03125, %v35_v16 }
 0x122   :  { %v41_v18 = vadd.f32 1e-06, %v39_v17 }
 0x123   :  { %v38_v19 = vpop.xlane.xlu1 %37 }
 0x124   :  { %87 = vrsqrt.f32 %v41_v18  ;;  %v40_v20 = vmul.f32 0.03125, %v38_v19 }
 0x126   :  { %v42_v21 = vadd.f32 1e-06, %v40_v20 }
 0x128   :  { %89 = vrsqrt.f32 %v42_v21 }
 0x131   :  { %v88_v22 = vpop.eup %87 }
 0x132   :  { %v45_v24 = vmul.f32 %v88_v22, %v29_v8 }
 0x134   :  { %v54_v26 = vmul.f32 %v81_v23, %v45_v24 }
 0x135   :  { %v90_v27 = vpop.eup %89 }
 0x136   :  { %v63_v28 = vadd.f32 %v82_v25, %v54_v26  ;;  %v46_v29 = vmul.f32 %v90_v27, %v30_v12 }
 0x138   :  { %v85_v30 = vpack.c.bf16 %v63_v28, %v63_v28  ;;  %v55_v31 = vmul.f32 %v81_v23, %v46_v29 }
 0x13a   :  { %74 = vst.msk [vmem:[%s134_s3] sm:$0xf] %vm73_vm2, %v85_v30  ;;  %v64_v32 = vadd.f32 %v82_v25, %v55_v31 }
 0x13c   :  { %v86_v33 = vpack.c.bf16 %v64_v32, %v64_v32 }
 0x13e   :  { %76 = vst.msk [vmem:[%s134_s3 + $0x4] sm:$0x1] %vm75_vm3, %v86_v33 }

// kernel: vit_forward.20
= control target key start
LH: loop header
LB: loop body
LE: loop exit
PB: predicated region body
PF: predicated region fallthrough
CT: control target
= control target key end

     0   :  { %s1530_s9 = smov 0   ;;  %s1532_s10 = smov 0   ;;  %s1750_s0 = inlined_call_operand.vmem [shape: bf16[2,5,96], index: 0, kind: input, shape index: {}, may-alias: {0,1}]   ;;  %s1751_s1 = inlined_call_operand.vmem [shape: bf16[2,5,96], index: 1, kind: input, shape index: {}, may-alias: {0,1}]   ;;  %s1752_s2 = inlined_call_operand.vmem [shape: bf16[2,5,32], index: 2, kind: output, shape index: {}]  }
   0x1   :  { %s1534_s11 = smov 0  }
   0x2 LB: > { %s24_s12 = sadd.s32 1, %s1440_s10  ;;  %p1121_p0 = scmp.ge.s32.totalorder %s1444_s11, 1  ;;  %s1444_s11 = sphi %s1534_s11, %s12_s11   ;;  %s1440_s10 = sphi %s1532_s10, %s1754_s10   ;;  %s1436_s9 = sphi %s1530_s9, %s1753_s9  }
   0x3   : > { %p26_p1 = scmp.ge.s32.totalorder %s24_s12, 2  ;;  %p139_p2 = scmp.lt.s32.totalorder %s1444_s11, 3 }
   0x5   : > { %s1756_s12 = smov (%p26_p1, %s24_s12), 0  ;;  %p140_p3 = pnand %p1121_p0, %p139_p2 }
   0x6   : > { %p169_p4 = scmp.lt.s32.totalorder (!%p140_p3), %s1436_s9, 1  ;;  %s1496_s20 = smov (!%p140_p3), 96  }
   0x7   : > { %143 = sbr.rel (%p140_p3) target bundleno = 3995 (0xf9b), region = 28  ;;  %s1584_s24 = smov (!%p140_p3), 0  }
   0xc   : > { %v1494_v0 = vmov 0.0   ;;  %vm1495_vm0 = vmmov 0   ;;  %s1758_s9 = smov (!%p169_p4, %s1436_s9), 1  ;;  %vm198_vm1 = vcmask 64512   ;;  %vm249_vm3 = vcmask 36864  }
   0xd   : > { %1165 = vmatprep.subr.bf16.mxu0 %v1494_v0  ;;  %1167 = vmatprep.mubr.msk.bf16.mxu0 %vm1495_vm0, %v1494_v0  ;;  %s1122_s13 = sshll.u32 %s1758_s9, 2 }
   0xe   : > { %s1554_s16 = scalar_lea.vmem %s1751_s1, %s1122_s13  ;;  %s1559_s19 = scalar_lea.vmem %s1752_s2, %s1122_s13 }
   0xf   : > { %v1562_v1 = vld [vmem:[%s1554_s16] ss:$0 sps:$4 sm:$0x77]   ;;  %s1568_s23 = scalar_lea.vmem %s1750_s0, %s1122_s13 }
  0x10   : > { %196 = vrot.lane.b32.xlu0 %v1562_v1, %s1496_s20  ;;  %v188_v2 = vld [vmem:[%s1568_s23] sm:$0x7] }
  0x11   : > { %v189_v3 = vunpack.c.l.bf16 %v188_v2 }
  0x13   : > { %v190_v5 = vmul.f32 0.35355338, %v189_v3 }
  0x15   : > { %v191_v7 = vpack.c.bf16 %v190_v5, %v190_v5 }
  0x82   : > { %v197_v4 = vpop.permute.xlu0 %196 }
  0x83   : > { %v203_v6 = vsel %vm198_vm1, %v197_v4, 0 }
  0x84   : > { %1166 = vmatpush3.bf16.xpose.msra.mxu0 %v203_v6 }
  0x8b   : > { %1168 = vmatmul.mubr.msk.bf16.vlgmr.msra.gmra.mxu0 %vm198_vm1, %v191_v7 }
 0x14b   : > { %v1573_v8 = vpop.f32.mrf.mxu0 }
 0x14c   : > { %vm246_vm2 = vcmp.ge.s32.totalorder %v1573_v8, 0  ;;  %v247_v9 = vxor.u32 2147483647, %v1573_v8 }
 0x14d   : > { %v1169_v10 = vpop.f32.mrf.mxu0 }
 0x14e   : > { %v1578_v11 = vsel %vm246_vm2, %v1573_v8, %v247_v9 }
 0x14f   : > { %v242_v12 = vpop.f32.mrf.mxu0  ;;  %v266_v13 = vsel %vm249_vm3, %v1578_v11, 2147483648  ;;  %v250_v14 = vsel %vm249_vm3, %v1578_v11, 2147483647 }
 0x150   : > { %v268_v15 = vshra.s32 %v266_v13, 16  ;;  %v252_v16 = vshra.s32 %v250_v14, 16  ;;  %v251_v20 = vand.u32 65535, %v250_v14  ;;  %v267_v24 = vand.u32 65535, %v266_v13 }
 0x151   : > { %v1170_v17 = vpop.f32.mrf.mxu0 }
 0x152   : > { %v270_v18 = vcvt.s32.f32 %v268_v15  ;;  %v254_v19 = vcvt.s32.f32 %v252_v16  ;;  %v253_v23 = vcvt.s32.f32 %v251_v20  ;;  %v269_v26 = vcvt.s32.f32 %v267_v24 }
 0x154   : > { %271 = vmax.xlane.f32.xlu1 %v270_v18  ;;  %255 = vmin.xlane.f32.xlu0 %v254_v19 }
 0x1dd   : > { %v272_v21 = vpop.xlane.xlu1 %271  ;;  %v256_v22 = vpop.xlane.xlu0 %255 }
 0x1de   : > { %vm257_vm4 = vcmp.eq.f32.partialorder %v254_v19, %v256_v22  ;;  %vm273_vm5 = vcmp.eq.f32.partialorder %v270_v18, %v272_v21  ;;  %v262_v28 = vcvt.f32.s32 %v256_v22  ;;  %v278_v30 = vcvt.f32.s32 %v272_v21 }
 0x1df   : > { %v258_v25 = vsel %vm257_vm4, %v253_v23, inf  ;;  %v274_v27 = vsel %vm273_vm5, %v269_v26, -inf }
 0x1e0   : > { %259 = vmin.xlane.f32.xlu1 %v258_v25  ;;  %v263_v31 = vshll.u32 %v262_v28, 16  ;;  %v279_v35 = vshll.u32 %v278_v30, 16 }
 0x1e4   : > { %275 = vmax.xlane.f32.xlu1 %v274_v27 }
 0x269   : > { %v260_v29 = vpop.xlane.xlu1 %259 }
 0x26a   : > { %v261_v32 = vcvt.f32.s32 %v260_v29 }
 0x26c   : > { %v264_v33 = vadd.s32 %v263_v31, %v261_v32 }
 0x26d   : > { %v276_v34 = vpop.xlane.xlu1 %275 }
 0x26e   : > { %v1127_v36 = vadd.s32 4294967295, %v264_v33   ;;  %v277_v37 = vcvt.f32.s32 %v276_v34 }
 0x270   : > { %v280_v38 = vadd.s32 %v279_v35, %v277_v37   ;;  %v1450_v40 = vmov %v1127_v36  }
 0x272   : > { %v1446_v39 = vmov %v280_v38  }
 0x273 LB: >> { %v289_v41 = vshra.s32 %v1452_v40, 1  ;;  %v290_v42 = vshra.s32 %v1448_v39, 1  ;;  %v292_v43 = vand.u32 %v1448_v39, %v1452_v40  ;;  %v1497_v47 = vmov 0   ;;  %s286_s24 = sadd.s32 1, %s1456_s24   ;;  %s1456_s24 = sphi %s1584_s24, %s286_s24   ;;  %v1452_v40 = vphi %v1450_v40, %v311_v40   ;;  %v1448_v39 = vphi %v1446_v39, %v1447_v39  }
 0x274   : >> { %p283_p5 = scmp.ge.s32.totalorder %s286_s24, 32  }
 0x275   : >> { %v291_v44 = vadd.s32 %v290_v42, %v289_v41  ;;  %v293_v45 = vand.u32 1, %v292_v43  ;;  %1171 = vmatprep.subr.bf16.mxu1 (%p283_p5), %v1494_v0  ;;  %1173 = vmatprep.mubr.msk.bf16.mxu1 (%p283_p5), %vm1495_vm0, %v1494_v0  ;;  %s1498_s25 = smov (%p283_p5), 64   ;;  %v1602_v63 = vld [vmem:[%s1554_s16] ss:$0 sps:$4 sm:$0x77] (%p283_p5)   ;;  %s1499_s26 = smov (%p283_p5), 88  }
 0x276   : > { %327 = vrot.lane.b32.xlu1 (%p283_p5), %v1562_v1, %s1498_s25  ;;  %v387_v7 = vld [vmem:[%s1568_s23] sm:$0x7] (%p283_p5)  ;;  %vm333_vm9 = vcmask (%p283_p5), 1041408   ;;  %vm334_vm10 = vcmask (%p283_p5), 1042432   ;;  %v1500_v10 = vmov (%p283_p5), 65535   ;;  %s1501_s27 = smov (%p283_p5), 120  }
 0x277   : >> { %v294_v46 = vadd.s32 %v293_v45, %v291_v44  ;;  %v335_v1 = vsel (%p283_p5), %vm333_vm9, 4294967295, %v1500_v10  ;;  %vm329_vm11 = vcmask (%p283_p5), 39936   ;;  %vm381_vm12 = vcmask (%p283_p5), 59392   ;;  %v384_v23 = vld [vmem:[%s1559_s19] sm:$0x7] (%p283_p5)  ;;  %s1630_s28 = smov (%p283_p5), 0  }
 0x278   : > { %vm382_vm13 = vsmask.f32 (%p283_p5), 2304 }
 0x279   : >> { %vm295_vm6 = vcmp.gt.s32.totalorder %v1578_v11, %v294_v46  ;;  %vm383_vm14 = vmand (%p283_p5), %vm381_vm12, %vm382_vm13 }
 0x27a   : >> { %v296_v48 = vsel %vm295_vm6, 1, %v1497_v47  ;;  %398 = vrot.lane.b32.xlu1 (%p283_p5), %v1602_v63, %s1499_s26 }
 0x27b   : >> { %v297_v49 = vsel %vm249_vm3, %v296_v48, 0 }
 0x27c   : >> { %v299_v50 = vshrl.u32 %v297_v49, 16  ;;  %v298_v51 = vand.u32 65535, %v297_v49 }
 0x27e   : >> { %v301_v52 = vcvt.s32.f32 %v299_v50  ;;  %v300_v53 = vcvt.s32.f32 %v298_v51 }
 0x280   : >> { %304 = vadd.xlane.f32.xlu0 %v301_v52 }
 0x284   : >> { %302 = vadd.xlane.f32.xlu0 %v300_v53 }
 0x2e8   : > { %v328_v9 = vpop.permute.xlu1 (%p283_p5), %327 }
 0x2ec   : > { %v399_v17 = vpop.permute.xlu1 (%p283_p5), %398 }
 0x2ed   : > { %v404_v19 = vsel (%p283_p5), %vm198_vm1, %v399_v17, 0 }
 0x309   : >> { %v305_v54 = vpop.xlane.xlu0 %304 }
 0x30a   : >> { %v307_v55 = vcvt.f32.s32 %v305_v54 }
 0x30c   : >> { %v308_v57 = vshll.u32 %v307_v55, 16 }
 0x30d   : >> { %v303_v56 = vpop.xlane.xlu0 %302 }
 0x30e   : >> { %v306_v58 = vcvt.f32.s32 %v303_v56 }
 0x310   : >> { %v309_v59 = vadd.s32 %v308_v57, %v306_v58  ;;  %285 = sbr.rel (!%p283_p5) target bundleno = 627 (0x273), region = 89 }
 0x312   : >> { %vm310_vm7 = vcmp.ge.s32.totalorder %v309_v59, 3 }
 0x313   : >> { %v311_v40 = vsel %vm310_vm7, %v294_v46, %v1452_v40   ;;  %v312_v60 = vsel %vm310_vm7, %v1448_v39, %v294_v46  }
 0x314   : >> { %v1447_v39 = vmov %v312_v60   ;;  %vm313_vm8 = vcmp.ge.s32.totalorder (%p283_p5), %v1578_v11, %v312_v60  ;;  %v1607_v11 = vsel (%p283_p5), %vm334_vm10, %v335_v1, 0 }
 0x315   : > { %v314_v61 = vsel %vm313_vm8, %v1573_v8, -1e+30  ;;  %v388_v8 = vunpack.c.l.bf16 %v387_v7  ;;  %v338_v12 = vand.u32 %v1607_v11, %v328_v9 }
 0x316   : > { %v315_v62 = vsel %vm249_vm3, %v314_v61, -inf }
 0x317   : > { %316 = vmax.xlane.f32.xlu0 %v315_v62  ;;  %v389_v13 = vmul.f32 0.35355338, %v388_v8  ;;  %1172 = vmatpush3.bf16.msra.mxu1 %v338_v12 }
 0x318   : > { %1177 = vmatprep.subr.bf16.mxu1 %v1494_v0 }
 0x319   : > { %v390_v14 = vpack.c.bf16 %v389_v13, %v389_v13 }
 0x3a0   : > { %v317_v2 = vpop.xlane.xlu0 %316 }
 0x3a1   : > { %v318_v3 = vsub.f32 %v314_v61, %v317_v2 }
 0x3a3   : > { %v319_v4 = vmul.f32 1.442695, %v318_v3 }
 0x3a5   : > { %1356 = vpow2.f32 %v319_v4 }
 0x3b2   : > { %v1357_v5 = vpop.eup %1356 }
 0x3b3   : > { %v321_v6 = vsel %vm249_vm3, %v1357_v5, 0.0 }
 0x3b4   : > { %322 = vadd.xlane.f32.xlu0 %v321_v6 }
 0x3ca   : > { %393 = vrot.lane.b32.xlu0 %v390_v14, %s1501_s27 }
 0x43d   : > { %v323_v15 = vpop.xlane.xlu0 %322 }
 0x43e   : > { %1358 = vrcp.f32 %v323_v15 }
 0x441   : > { %v394_v21 = vpop.permute.xlu0 %393 }
 0x44b   : > { %v1359_v16 = vpop.eup %1358 }
 0x44c   : > { %v325_v18 = vmul.f32 %v1359_v16, %v1357_v5 }
 0x44e   : > { %v326_v20 = vpack.c.bf16 %v325_v18, %v325_v18 }
 0x450   : > { %1174 = vmatmul.mubr.msk.bf16.vlgmr.msra.gmra.mxu1 %vm329_vm11, %v326_v20 }
 0x451   : > { %1178 = vmatpush3.bf16.xpose.msra.mxu1 %v404_v19  ;;  %1179 = vmatprep.mubr.msk.bf16.mxu1 %vm1495_vm0, %v1494_v0 }
 0x458   : > { %1180 = vmatmul.mubr.msk.bf16.vlgmr.msra.gmra.mxu1 %vm198_vm1, %v394_v21 }
 0x510   : > { %v374_v22 = vpop.f32.mrf.mxu1 }
 0x511   : > { %v380_v24 = vpack.c.bf16 %v374_v22, %v374_v22 }
 0x512   : > { %v1175_v25 = vpop.f32.mrf.mxu1 }
 0x513   : > { %v385_v26 = vsel %vm383_vm14, %v380_v24, %v384_v23 }
 0x514   : > { %386 = vst [vmem:[%s1559_s19] sm:$0x7] %v385_v26  ;;  %v377_v27 = vpop.f32.mrf.mxu1 }
 0x516   : > { %v1176_v28 = vpop.f32.mrf.mxu1 }
 0x518   : > { %v1619_v29 = vpop.f32.mrf.mxu1 }
 0x519   : > { %vm447_vm15 = vcmp.ge.s32.totalorder %v1619_v29, 0  ;;  %v448_v30 = vxor.u32 2147483647, %v1619_v29 }
 0x51a   : > { %v1181_v31 = vpop.f32.mrf.mxu1 }
 0x51b   : > { %v1624_v32 = vsel %vm447_vm15, %v1619_v29, %v448_v30 }
 0x51c   : > { %v443_v33 = vpop.f32.mrf.mxu1  ;;  %v466_v34 = vsel %vm249_vm3, %v1624_v32, 2147483648  ;;  %v450_v35 = vsel %vm249_vm3, %v1624_v32, 2147483647 }
 0x51d   : > { %v468_v36 = vshra.s32 %v466_v34, 16  ;;  %v452_v37 = vshra.s32 %v450_v35, 16  ;;  %v451_v41 = vand.u32 65535, %v450_v35  ;;  %v467_v45 = vand.u32 65535, %v466_v34 }
 0x51e   : > { %v1182_v38 = vpop.f32.mrf.mxu1 }
 0x51f   : > { %v470_v39 = vcvt.s32.f32 %v468_v36  ;;  %v454_v40 = vcvt.s32.f32 %v452_v37  ;;  %v453_v44 = vcvt.s32.f32 %v451_v41  ;;  %v469_v47 = vcvt.s32.f32 %v467_v45 }
 0x521   : > { %471 = vmax.xlane.f32.xlu0 %v470_v39  ;;  %455 = vmin.xlane.f32.xlu1 %v454_v40 }
 0x5aa   : > { %v472_v42 = vpop.xlane.xlu0 %471  ;;  %v456_v43 = vpop.xlane.xlu1 %455 }
 0x5ab   : > { %vm457_vm2 = vcmp.eq.f32.partialorder %v454_v40, %v456_v43  ;;  %vm473_vm4 = vcmp.eq.f32.partialorder %v470_v39, %v472_v42  ;;  %v462_v49 = vcvt.f32.s32 %v456_v43  ;;  %v478_v51 = vcvt.f32.s32 %v472_v42 }
 0x5ac   : > { %v458_v46 = vsel %vm457_vm2, %v453_v44, inf  ;;  %v474_v48 = vsel %vm473_vm4, %v469_v47, -inf }
 0x5ad   : > { %459 = vmin.xlane.f32.xlu1 %v458_v46  ;;  %v463_v52 = vshll.u32 %v462_v49, 16  ;;  %v479_v56 = vshll.u32 %v478_v51, 16 }
 0x5b1   : > { %475 = vmax.xlane.f32.xlu1 %v474_v48 }
 0x636   : > { %v460_v50 = vpop.xlane.xlu1 %459 }
 0x637   : > { %v461_v53 = vcvt.f32.s32 %v460_v50 }
 0x639   : > { %v464_v54 = vadd.s32 %v463_v52, %v461_v53 }
 0x63a   : > { %v476_v55 = vpop.xlane.xlu1 %475 }
 0x63b   : > { %v1131_v57 = vadd.s32 4294967295, %v464_v54   ;;  %v477_v58 = vcvt.f32.s32 %v476_v55 }
 0x63d   : > { %v480_v59 = vadd.s32 %v479_v56, %v477_v58   ;;  %v1462_v61 = vmov %v1131_v57  }
 0x63f   : > { %v1458_v60 = vmov %v480_v59  }
 0x640 LB: >> { %v489_v62 = vshra.s32 %v1464_v61, 1  ;;  %v490_v2 = vshra.s32 %v1460_v60, 1  ;;  %v492_v3 = vand.u32 %v1460_v60, %v1464_v61  ;;  %v1502_v7 = vmov 0   ;;  %s486_s28 = sadd.s32 1, %s1468_s28   ;;  %s1468_s28 = sphi %s1630_s28, %s486_s28   ;;  %v1464_v61 = vphi %v1462_v61, %v511_v61   ;;  %v1460_v60 = vphi %v1458_v60, %v1459_v60  }
 0x641   : >> { %p483_p6 = scmp.ge.s32.totalorder %s486_s28, 32  }
 0x642   : >> { %v491_v4 = vadd.s32 %v490_v2, %v489_v62  ;;  %v493_v5 = vand.u32 1, %v492_v3  ;;  %1189 = vmatprep.subr.bf16.mxu1 (%p483_p6), %v1494_v0  ;;  %1191 = vmatprep.mubr.msk.bf16.mxu1 (%p483_p6), %vm1495_vm0, %v1494_v0  ;;  %v587_v22 = vld [vmem:[%s1568_s23] sm:$0x7] (%p483_p6)  ;;  %s1503_s29 = smov (%p483_p6), 112   ;;  %s1504_s30 = smov (%p483_p6), 80   ;;  %vm582_vm12 = vcmask (%p483_p6), 124992  }
 0x643   : > { %1183 = vmatprep.subr.bf16.mxu0 (%p483_p6), %v1494_v0  ;;  %1185 = vmatprep.mubr.msk.bf16.mxu0 (%p483_p6), %vm1495_vm0, %v1494_v0  ;;  %v588_v24 = vunpack.c.l.bf16 (%p483_p6), %v587_v22  ;;  %v1651_v27 = vld [vmem:[%s1554_s16] ss:$0 sps:$4 sm:$0x77] (%p483_p6)   ;;  %s1505_s3 = smov (%p483_p6), 56   ;;  %s1506_s4 = smov (%p483_p6), 8   ;;  %vm583_vm14 = vmand (%p483_p6), %vm582_vm12, %vm382_vm13 }
 0x644   : >> { %v494_v6 = vadd.s32 %v493_v5, %v491_v4  ;;  %s1674_s5 = smov (%p483_p6), 0  }
 0x645   : > { %v589_v25 = vmul.f32 (%p483_p6), 0.35355338, %v588_v24 }
 0x646   : >> { %vm495_vm5 = vcmp.gt.s32.totalorder %v1624_v32, %v494_v6 }
 0x647   : >> { %v496_v8 = vsel %vm495_vm5, 1, %v1502_v7  ;;  %v590_v26 = vpack.c.bf16 (%p483_p6), %v589_v25, %v589_v25 }
 0x648   : >> { %v497_v9 = vsel %vm249_vm3, %v496_v8, 0 }
 0x649   : >> { %v499_v10 = vshrl.u32 %v497_v9, 16  ;;  %v498_v1 = vand.u32 65535, %v497_v9  ;;  %593 = vrot.lane.b32.xlu1 (%p483_p6), %v590_v26, %s1503_s29 }
 0x64b   : >> { %v501_v12 = vcvt.s32.f32 %v499_v10  ;;  %v500_v13 = vcvt.s32.f32 %v498_v1 }
 0x64d   : >> { %504 = vadd.xlane.f32.xlu0 %v501_v12 }
 0x651   : >> { %502 = vadd.xlane.f32.xlu0 %v500_v13 }
 0x6bb   : > { %v594_v33 = vpop.permute.xlu1 (%p483_p6), %593 }
 0x6d6   : >> { %v505_v14 = vpop.xlane.xlu0 %504 }
 0x6d7   : >> { %v507_v15 = vcvt.f32.s32 %v505_v14 }
 0x6d9   : >> { %v508_v17 = vshll.u32 %v507_v15, 16  ;;  %v584_v15 = vld [vmem:[%s1559_s19] sm:$0x7] (%p483_p6) }
 0x6da   : >> { %v503_v16 = vpop.xlane.xlu0 %502 }
 0x6db   : >> { %v506_v18 = vcvt.f32.s32 %v503_v16 }
 0x6dd   : >> { %v509_v19 = vadd.s32 %v508_v17, %v506_v18  ;;  %485 = sbr.rel (!%p483_p6) target bundleno = 1600 (0x640), region = 100 }
 0x6df   : >> { %vm510_vm6 = vcmp.ge.s32.totalorder %v509_v19, 3 }
 0x6e0   : >> { %v511_v61 = vsel %vm510_vm6, %v494_v6, %v1464_v61   ;;  %v512_v20 = vsel %vm510_vm6, %v1460_v60, %v494_v6  }
 0x6e1   : >> { %v1459_v60 = vmov %v512_v20   ;;  %vm513_vm7 = vcmp.ge.s32.totalorder (%p483_p6), %v1624_v32, %v512_v20 }
 0x6e2   : > { %v514_v21 = vsel %vm513_vm7, %v1619_v29, -1e+30 }
 0x6e3   : > { %v515_v23 = vsel %vm249_vm3, %v514_v21, -inf }
 0x6e4   : > { %516 = vmax.xlane.f32.xlu0 %v515_v23 }
 0x6fa   : > { %598 = vrot.lane.b32.xlu0 %v1651_v27, %s1504_s30 }
 0x6fe   : > { %527 = vrot.lane.b32.xlu0 %v1602_v63, %s1505_s3 }
 0x76d   : > { %v517_v28 = vpop.xlane.xlu0 %516 }
 0x76e   : > { %v518_v29 = vsub.f32 %v514_v21, %v517_v28 }
 0x770   : > { %v519_v30 = vmul.f32 1.442695, %v518_v29 }
 0x771   : > { %v599_v31 = vpop.permute.xlu0 %598 }
 0x772   : > { %1361 = vpow2.f32 %v519_v30  ;;  %v604_v32 = vsel %vm198_vm1, %v599_v31, 0 }
 0x773   : > { %1190 = vmatpush3.bf16.xpose.msra.mxu1 %v604_v32 }
 0x775   : > { %v528_v36 = vpop.permute.xlu0 %527 }
 0x776   : > { %v533_v37 = vand.u32 %v528_v36, %v1607_v11 }
 0x778   : > { %1184 = vmatpush3.bf16.msra.mxu0 %v533_v37 }
 0x77a   : > { %1192 = vmatmul.mubr.msk.bf16.vlgmr.msra.gmra.mxu1 %vm198_vm1, %v594_v33 }
 0x77f   : > { %v1362_v34 = vpop.eup %1361 }
 0x780   : > { %v521_v35 = vsel %vm249_vm3, %v1362_v34, 0.0 }
 0x781   : > { %522 = vadd.xlane.f32.xlu1 %v521_v35 }
 0x80a   : > { %v523_v63 = vpop.xlane.xlu1 %522 }
 0x80b   : > { %1363 = vrcp.f32 %v523_v63 }
 0x818   : > { %v1364_v38 = vpop.eup %1363 }
 0x819   : > { %v525_v39 = vmul.f32 %v1364_v38, %v1362_v34 }
 0x81b   : > { %v526_v40 = vpack.c.bf16 %v525_v39, %v525_v39 }
 0x81d   : > { %1186 = vmatmul.mubr.msk.bf16.vlgmr.msra.gmra.mxu0 %vm329_vm11, %v526_v40 }
 0x83a   : > { %v1660_v41 = vpop.f32.mrf.mxu1 }
 0x83b   : > { %vm647_vm8 = vcmp.ge.s32.totalorder %v1660_v41, 0  ;;  %v648_v42 = vxor.u32 2147483647, %v1660_v41 }
 0x83c   : > { %v1193_v43 = vpop.f32.mrf.mxu1 }
 0x83d   : > { %v1665_v44 = vsel %vm647_vm8, %v1660_v41, %v648_v42 }
 0x83e   : > { %v643_v45 = vpop.f32.mrf.mxu1  ;;  %v666_v46 = vsel %vm249_vm3, %v1665_v44, 2147483648  ;;  %v650_v47 = vsel %vm249_vm3, %v1665_v44, 2147483647 }
 0x83f   : > { %v668_v48 = vshra.s32 %v666_v46, 16  ;;  %v652_v49 = vshra.s32 %v650_v47, 16  ;;  %v651_v53 = vand.u32 65535, %v650_v47  ;;  %v667_v57 = vand.u32 65535, %v666_v46 }
 0x840   : > { %v1194_v50 = vpop.f32.mrf.mxu1 }
 0x841   : > { %v670_v51 = vcvt.s32.f32 %v668_v48  ;;  %v654_v52 = vcvt.s32.f32 %v652_v49  ;;  %v653_v56 = vcvt.s32.f32 %v651_v53  ;;  %v669_v59 = vcvt.s32.f32 %v667_v57 }
 0x843   : > { %671 = vmax.xlane.f32.xlu1 %v670_v51  ;;  %655 = vmin.xlane.f32.xlu0 %v654_v52 }
 0x8cc   : > { %v672_v54 = vpop.xlane.xlu1 %671  ;;  %v656_v55 = vpop.xlane.xlu0 %655 }
 0x8cd   : > { %vm657_vm9 = vcmp.eq.f32.partialorder %v654_v52, %v656_v55  ;;  %vm673_vm10 = vcmp.eq.f32.partialorder %v670_v51, %v672_v54  ;;  %v662_v5 = vcvt.f32.s32 %v656_v55  ;;  %v678_v7 = vcvt.f32.s32 %v672_v54 }
 0x8ce   : > { %v658_v58 = vsel %vm657_vm9, %v653_v56, inf  ;;  %v674_v60 = vsel %vm673_vm10, %v669_v59, -inf }
 0x8cf   : > { %659 = vmin.xlane.f32.xlu1 %v658_v58  ;;  %v663_v8 = vshll.u32 %v662_v5, 16  ;;  %v679_v12 = vshll.u32 %v678_v7, 16 }
 0x8d3   : > { %675 = vmax.xlane.f32.xlu1 %v674_v60 }
 0x8dd   : > { %v569_v61 = vpop.f32.mrf.mxu0 }
 0x8de   : > { %v1146_v3 = vpack.c.bf16 %v569_v61, %v569_v61 }
 0x8df   : > { %v1187_v62 = vpop.f32.mrf.mxu0 }
 0x8e1   : > { %v572_v2 = vpop.f32.mrf.mxu0 }
 0x8e3   : > { %v1188_v4 = vpop.f32.mrf.mxu0 }
 0x8e4   : > { %579 = vrot.lane.b32.xlu1 %v1146_v3, %s1506_s4 }
 0x958   : > { %v660_v6 = vpop.xlane.xlu1 %659 }
 0x959   : > { %v661_v9 = vcvt.f32.s32 %v660_v6 }
 0x95b   : > { %v664_v10 = vadd.s32 %v663_v8, %v661_v9 }
 0x95c   : > { %v676_v1 = vpop.xlane.xlu1 %675 }
 0x95d   : > { %v1136_v13 = vadd.s32 4294967295, %v664_v10   ;;  %v677_v14 = vcvt.f32.s32 %v676_v1 }
 0x95f   : > { %v680_v16 = vadd.s32 %v679_v12, %v677_v14   ;;  %v1474_v20 = vmov %v1136_v13  }
 0x960   : > { %v580_v17 = vpop.permute.xlu1 %579 }
 0x961   : > { %v585_v18 = vsel %vm583_vm14, %v580_v17, %v584_v15  ;;  %v1470_v19 = vmov %v680_v16  }
 0x962   : > { %586 = vst [vmem:[%s1559_s19] sm:$0x7] %v585_v18 }
 0x963 LB: >> { %v689_v21 = vshra.s32 %v1476_v20, 1  ;;  %v690_v22 = vshra.s32 %v1472_v19, 1  ;;  %v692_v23 = vand.u32 %v1472_v19, %v1476_v20  ;;  %v1507_v28 = vmov 0   ;;  %s686_s5 = sadd.s32 1, %s1480_s5   ;;  %s1480_s5 = sphi %s1674_s5, %s686_s5   ;;  %v1476_v20 = vphi %v1474_v20, %v711_v20   ;;  %v1472_v19 = vphi %v1470_v19, %v1471_v19  }
 0x964   : >> { %p683_p7 = scmp.ge.s32.totalorder %s686_s5, 32  }
 0x965   : >> { %v691_v24 = vadd.s32 %v690_v22, %v689_v21  ;;  %v693_v25 = vand.u32 1, %v692_v23  ;;  %1201 = vmatprep.subr.bf16.mxu1 (%p683_p7), %v1494_v0  ;;  %1203 = vmatprep.mubr.msk.bf16.mxu1 (%p683_p7), %vm1495_vm0, %v1494_v0  ;;  %v787_v43 = vld [vmem:[%s1568_s23] sm:$0x7] (%p683_p7)  ;;  %s1508_s6 = smov (%p683_p7), 104   ;;  %s1509_s7 = smov (%p683_p7), 72   ;;  %vm782_vm7 = vcmask (%p683_p7), 190592  }
 0x966   : > { %1195 = vmatprep.subr.bf16.mxu0 (%p683_p7), %v1494_v0  ;;  %1197 = vmatprep.mubr.msk.bf16.mxu0 (%p683_p7), %vm1495_vm0, %v1494_v0  ;;  %v788_v46 = vunpack.c.l.bf16 (%p683_p7), %v787_v43  ;;  %s1510_s8 = smov (%p683_p7), 48   ;;  %s1511_s9 = smov (%p683_p7), 16   ;;  %vm783_vm8 = vmand (%p683_p7), %vm782_vm7, %vm382_vm13 }
 0x967   : >> { %v694_v26 = vadd.s32 %v693_v25, %v691_v24  ;;  %s1718_s13 = smov (%p683_p7), 0  }
 0x968   : > { %v789_v47 = vmul.f32 (%p683_p7), 0.35355338, %v788_v46 }
 0x969   : >> { %vm695_vm15 = vcmp.gt.s32.totalorder %v1665_v44, %v694_v26 }
 0x96a   : >> { %v696_v29 = vsel %vm695_vm15, 1, %v1507_v28  ;;  %v790_v48 = vpack.c.bf16 (%p683_p7), %v789_v47, %v789_v47 }
 0x96b   : >> { %v697_v30 = vsel %vm249_vm3, %v696_v29, 0 }
 0x96c   : >> { %v699_v31 = vshrl.u32 %v697_v30, 16  ;;  %v698_v32 = vand.u32 65535, %v697_v30  ;;  %793 = vrot.lane.b32.xlu1 (%p683_p7), %v790_v48, %s1508_s6 }
 0x96e   : >> { %v701_v33 = vcvt.s32.f32 %v699_v31  ;;  %v700_v34 = vcvt.s32.f32 %v698_v32 }
 0x970   : >> { %704 = vadd.xlane.f32.xlu0 %v701_v33 }
 0x974   : >> { %702 = vadd.xlane.f32.xlu0 %v700_v34 }
 0x9de   : > { %v794_v53 = vpop.permute.xlu1 (%p683_p7), %793 }
 0x9f9   : >> { %v705_v35 = vpop.xlane.xlu0 %704 }
 0x9fa   : >> { %v707_v36 = vcvt.f32.s32 %v705_v35 }
 0x9fc   : >> { %v708_v63 = vshll.u32 %v707_v36, 16  ;;  %v784_v36 = vld [vmem:[%s1559_s19] sm:$0x7] (%p683_p7) }
 0x9fd   : >> { %v703_v37 = vpop.xlane.xlu0 %702 }
 0x9fe   : >> { %v706_v38 = vcvt.f32.s32 %v703_v37 }
 0xa00   : >> { %v709_v39 = vadd.s32 %v708_v63, %v706_v38  ;;  %685 = sbr.rel (!%p683_p7) target bundleno = 2403 (0x963), region = 111 }
 0xa02   : >> { %vm710_vm2 = vcmp.ge.s32.totalorder %v709_v39, 3 }
 0xa03   : >> { %v711_v20 = vsel %vm710_vm2, %v694_v26, %v1476_v20   ;;  %v712_v40 = vsel %vm710_vm2, %v1472_v19, %v694_v26  }
 0xa04   : >> { %v1471_v19 = vmov %v712_v40   ;;  %vm713_vm4 = vcmp.ge.s32.totalorder (%p683_p7), %v1665_v44, %v712_v40  ;;  %v1695_v44 = vld [vmem:[%s1554_s16] ss:$0 sps:$4 sm:$0x77] (%p683_p7)  }
 0xa05   : > { %v714_v42 = vsel %vm713_vm4, %v1660_v41, -1e+30 }
 0xa06   : > { %v715_v45 = vsel %vm249_vm3, %v714_v42, -inf }
 0xa07   : > { %716 = vmax.xlane.f32.xlu0 %v715_v45 }
 0xa1d   : > { %798 = vrot.lane.b32.xlu0 %v1695_v44, %s1509_s7 }
 0xa21   : > { %727 = vrot.lane.b32.xlu0 %v1651_v27, %s1510_s8 }
 0xa90   : > { %v717_v41 = vpop.xlane.xlu0 %716 }
 0xa91   : > { %v718_v49 = vsub.f32 %v714_v42, %v717_v41 }
 0xa93   : > { %v719_v50 = vmul.f32 1.442695, %v718_v49 }
 0xa94   : > { %v799_v51 = vpop.permute.xlu0 %798 }
 0xa95   : > { %1366 = vpow2.f32 %v719_v50  ;;  %v804_v52 = vsel %vm198_vm1, %v799_v51, 0 }
 0xa96   : > { %1202 = vmatpush3.bf16.xpose.msra.mxu1 %v804_v52 }
 0xa98   : > { %v728_v56 = vpop.permute.xlu0 %727 }
 0xa99   : > { %v733_v57 = vand.u32 %v728_v56, %v1607_v11 }
 0xa9b   : > { %1196 = vmatpush3.bf16.msra.mxu0 %v733_v57 }
 0xa9d   : > { %1204 = vmatmul.mubr.msk.bf16.vlgmr.msra.gmra.mxu1 %vm198_vm1, %v794_v53 }
 0xaa2   : > { %v1367_v54 = vpop.eup %1366 }
 0xaa3   : > { %v721_v55 = vsel %vm249_vm3, %v1367_v54, 0.0 }
 0xaa4   : > { %722 = vadd.xlane.f32.xlu1 %v721_v55 }
 0xb2d   : > { %v723_v27 = vpop.xlane.xlu1 %722 }
 0xb2e   : > { %1368 = vrcp.f32 %v723_v27 }
 0xb3b   : > { %v1369_v58 = vpop.eup %1368 }
 0xb3c   : > { %v725_v59 = vmul.f32 %v1369_v58, %v1367_v54 }
 0xb3e   : > { %v726_v60 = vpack.c.bf16 %v725_v59, %v725_v59 }
 0xb40   : > { %1198 = vmatmul.mubr.msk.bf16.vlgmr.msra.gmra.mxu0 %vm329_vm11, %v726_v60 }
 0xb5d   : > { %v1704_v61 = vpop.f32.mrf.mxu1 }
 0xb5e   : > { %vm847_vm5 = vcmp.ge.s32.totalorder %v1704_v61, 0  ;;  %v848_v62 = vxor.u32 2147483647, %v1704_v61 }
 0xb5f   : > { %v1205_v2 = vpop.f32.mrf.mxu1 }
 0xb60   : > { %v1709_v3 = vsel %vm847_vm5, %v1704_v61, %v848_v62 }
 0xb61   : > { %v843_v4 = vpop.f32.mrf.mxu1  ;;  %v866_v5 = vsel %vm249_vm3, %v1709_v3, 2147483648  ;;  %v850_v6 = vsel %vm249_vm3, %v1709_v3, 2147483647 }
 0xb62   : > { %v868_v7 = vshra.s32 %v866_v5, 16  ;;  %v852_v8 = vshra.s32 %v850_v6, 16  ;;  %v851_v12 = vand.u32 65535, %v850_v6  ;;  %v867_v16 = vand.u32 65535, %v866_v5 }
 0xb63   : > { %v1206_v9 = vpop.f32.mrf.mxu1 }
 0xb64   : > { %v870_v10 = vcvt.s32.f32 %v868_v7  ;;  %v854_v1 = vcvt.s32.f32 %v852_v8  ;;  %v853_v15 = vcvt.s32.f32 %v851_v12  ;;  %v869_v18 = vcvt.s32.f32 %v867_v16 }
 0xb66   : > { %871 = vmax.xlane.f32.xlu1 %v870_v10  ;;  %855 = vmin.xlane.f32.xlu0 %v854_v1 }
 0xbef   : > { %v872_v13 = vpop.xlane.xlu1 %871  ;;  %v856_v14 = vpop.xlane.xlu0 %855 }
 0xbf0   : > { %vm857_vm1 = vcmp.eq.f32.partialorder %v854_v1, %v856_v14  ;;  %vm873_vm6 = vcmp.eq.f32.partialorder %v870_v10, %v872_v13  ;;  %v862_v25 = vcvt.f32.s32 %v856_v14  ;;  %v878_v28 = vcvt.f32.s32 %v872_v13 }
 0xbf1   : > { %v858_v17 = vsel %vm857_vm1, %v853_v15, inf  ;;  %v874_v19 = vsel %vm873_vm6, %v869_v18, -inf }
 0xbf2   : > { %859 = vmin.xlane.f32.xlu1 %v858_v17  ;;  %v863_v29 = vshll.u32 %v862_v25, 16  ;;  %v879_v33 = vshll.u32 %v878_v28, 16 }
 0xbf6   : > { %875 = vmax.xlane.f32.xlu1 %v874_v19 }
 0xc00   : > { %v769_v20 = vpop.f32.mrf.mxu0 }
 0xc01   : > { %v1147_v23 = vpack.c.bf16 %v769_v20, %v769_v20 }
 0xc02   : > { %v1199_v21 = vpop.f32.mrf.mxu0 }
 0xc04   : > { %v772_v22 = vpop.f32.mrf.mxu0 }
 0xc06   : > { %v1200_v24 = vpop.f32.mrf.mxu0 }
 0xc07   : > { %779 = vrot.lane.b32.xlu1 %v1147_v23, %s1511_s9 }
 0xc7b   : > { %v860_v26 = vpop.xlane.xlu1 %859 }
 0xc7c   : > { %v861_v30 = vcvt.f32.s32 %v860_v26 }
 0xc7e   : > { %v864_v31 = vadd.s32 %v863_v29, %v861_v30 }
 0xc7f   : > { %v876_v32 = vpop.xlane.xlu1 %875 }
 0xc80   : > { %v1141_v34 = vadd.s32 4294967295, %v864_v31   ;;  %v877_v35 = vcvt.f32.s32 %v876_v32 }
 0xc82   : > { %v880_v37 = vadd.s32 %v879_v33, %v877_v35   ;;  %v1486_v40 = vmov %v1141_v34  }
 0xc83   : > { %v780_v63 = vpop.permute.xlu1 %779 }
 0xc84   : > { %v785_v38 = vsel %vm783_vm8, %v780_v63, %v784_v36  ;;  %v1482_v39 = vmov %v880_v37  }
 0xc85   : > { %786 = vst [vmem:[%s1559_s19] sm:$0x7] %v785_v38 }
 0xc86 LB: >> { %v889_v42 = vshra.s32 %v1488_v40, 1  ;;  %v890_v43 = vshra.s32 %v1484_v39, 1  ;;  %v892_v45 = vand.u32 %v1484_v39, %v1488_v40  ;;  %v1512_v41 = vmov 0   ;;  %s886_s13 = sadd.s32 1, %s1492_s13   ;;  %s1492_s13 = sphi %s1718_s13, %s886_s13   ;;  %v1488_v40 = vphi %v1486_v40, %v911_v40   ;;  %v1484_v39 = vphi %v1482_v39, %v1483_v39  }
 0xc87   : >> { %p883_p8 = scmp.ge.s32.totalorder %s886_s13, 32  }
 0xc88   : >> { %v891_v46 = vadd.s32 %v890_v43, %v889_v42  ;;  %v893_v47 = vand.u32 1, %v892_v45  ;;  %1207 = vmatprep.subr.bf16.mxu0 (%p883_p8), %v1494_v0  ;;  %1209 = vmatprep.mubr.msk.bf16.mxu0 (%p883_p8), %vm1495_vm0, %v1494_v0  ;;  %s1513_s14 = smov (%p883_p8), 40   ;;  %s1514_s15 = smov (%p883_p8), 24   ;;  %vm982_vm0 = vcmask (%p883_p8), 256192  }
 0xc89   : > { %927 = vrot.lane.b32.xlu1 (%p883_p8), %v1695_v44, %s1513_s14 }
 0xc8a   : >> { %v894_v48 = vadd.s32 %v893_v47, %v891_v46 }
 0xc8c   : >> { %vm895_vm9 = vcmp.gt.s32.totalorder %v1709_v3, %v894_v48 }
 0xc8d   : >> { %v896_v49 = vsel %vm895_vm9, 1, %v1512_v41 }
 0xc8e   : >> { %v897_v50 = vsel %vm249_vm3, %v896_v49, 0 }
 0xc8f   : >> { %v899_v51 = vshrl.u32 %v897_v50, 16  ;;  %v898_v52 = vand.u32 65535, %v897_v50 }
 0xc91   : >> { %v901_v53 = vcvt.s32.f32 %v899_v51  ;;  %v900_v54 = vcvt.s32.f32 %v898_v52 }
 0xc93   : >> { %904 = vadd.xlane.f32.xlu0 %v901_v53 }
 0xc97   : >> { %902 = vadd.xlane.f32.xlu0 %v900_v54 }
 0xcfb   : > { %v928_v8 = vpop.permute.xlu1 (%p883_p8), %927 }
 0xcfc   : > { %v933_v9 = vand.u32 (%p883_p8), %v928_v8, %v1607_v11  ;;  %v984_v11 = vld [vmem:[%s1559_s19] sm:$0x7] (%p883_p8) }
 0xcfe   : > { %1208 = vmatpush3.bf16.msra.mxu0 (%p883_p8), %v933_v9 }
 0xd1c   : >> { %v905_v55 = vpop.xlane.xlu0 %904 }
 0xd1d   : >> { %v907_v56 = vcvt.f32.s32 %v905_v55 }
 0xd1f   : >> { %v908_v27 = vshll.u32 %v907_v56, 16 }
 0xd20   : >> { %v903_v57 = vpop.xlane.xlu0 %902 }
 0xd21   : >> { %v906_v58 = vcvt.f32.s32 %v903_v57 }
 0xd23   : >> { %v909_v59 = vadd.s32 %v908_v27, %v906_v58  ;;  %885 = sbr.rel (!%p883_p8) target bundleno = 3206 (0xc86), region = 122 }
 0xd25   : >> { %vm910_vm10 = vcmp.ge.s32.totalorder %v909_v59, 3 }
 0xd26   : >> { %v911_v40 = vsel %vm910_vm10, %v894_v48, %v1488_v40   ;;  %v912_v60 = vsel %vm910_vm10, %v1484_v39, %v894_v48  }
 0xd27   : >> { %v1483_v39 = vmov %v912_v60   ;;  %vm913_vm12 = vcmp.ge.s32.totalorder (%p883_p8), %v1709_v3, %v912_v60 }
 0xd28   : > { %v914_v62 = vsel %vm913_vm12, %v1704_v61, -1e+30 }
 0xd29   : > { %v915_v2 = vsel %vm249_vm3, %v914_v62, -inf }
 0xd2a   : > { %916 = vmax.xlane.f32.xlu0 %v915_v2 }
 0xdb3   : > { %v917_v4 = vpop.xlane.xlu0 %916 }
 0xdb4   : > { %v918_v5 = vsub.f32 %v914_v62, %v917_v4 }
 0xdb6   : > { %v919_v6 = vmul.f32 1.442695, %v918_v5 }
 0xdb8   : > { %1370 = vpow2.f32 %v919_v6 }
 0xdc5   : > { %v1371_v7 = vpop.eup %1370 }
 0xdc6   : > { %v921_v3 = vsel %vm249_vm3, %v1371_v7, 0.0  ;;  %vm983_vm3 = vmand %vm982_vm0, %vm382_vm13 }
 0xdc7   : > { %922 = vadd.xlane.f32.xlu0 %v921_v3 }
 0xe50   : > { %v923_v0 = vpop.xlane.xlu0 %922 }
 0xe51   : > { %1372 = vrcp.f32 %v923_v0 }
 0xe5e   : > { %v1373_v61 = vpop.eup %1372 }
 0xe5f   : > { %v925_v10 = vmul.f32 %v1373_v61, %v1371_v7 }
 0xe61   : > { %v926_v1 = vpack.c.bf16 %v925_v10, %v925_v10 }
 0xe63   : > { %1210 = vmatmul.mubr.msk.bf16.vlgmr.msra.gmra.mxu0 %vm329_vm11, %v926_v1 }
 0xf23   : > { %v969_v44 = vpop.f32.mrf.mxu0 }
 0xf24   : > { %v1148_v12 = vpack.c.bf16 %v969_v44, %v969_v44 }
 0xf25   : > { %v1211_v13 = vpop.f32.mrf.mxu0 }
 0xf26   : > { %979 = vrot.lane.b32.xlu1 %v1148_v12, %s1514_s15 }
 0xf27   : > { %v972_v14 = vpop.f32.mrf.mxu0 }
 0xf29   : > { %v1212_v15 = vpop.f32.mrf.mxu0 }
 0xf98   : > { %v980_v16 = vpop.permute.xlu1 %979 }
 0xf99   : > { %v985_v17 = vsel %vm983_vm3, %v980_v16, %v984_v11 }
 0xf9a   : > { %986 = vst [vmem:[%s1559_s19] sm:$0x7] %v985_v17 }
 0xf9b PF: > { %s12_s11 = sadd.s32 1, %s1444_s11   ;;  %s1753_s9 = smov %s1440_s10 }
 0xf9c   : > { %p9_p9 = scmp.ge.s32.totalorder %s12_s11, 4   ;;  %s1754_s10 = smov %s1756_s12 }
 0xf9e   :  { %11 = sbr.rel (!%p9_p9) target bundleno = 2 (0x2), region = 133 }

// kernel: vit_forward.21
= control target key start
LH: loop header
LB: loop body
LE: loop exit
PB: predicated region body
PF: predicated region fallthrough
CT: control target
= control target key end

     0   :  { %vm22_vm0 = vcmask 261120   ;;  %v162_v0 = vmov 0.0   ;;  %vm163_vm1 = vmmov 0   ;;  %vm24_vm2 = vcmask 254976   ;;  %s216_s1 = inlined_call_operand.vmem [shape: bf16[32,32], index: 1, kind: input, shape index: {}]   ;;  %s217_s0 = inlined_call_operand.vmem [shape: bf16[10,32], index: 0, kind: input, shape index: {}]   ;;  %s218_s3 = inlined_call_operand.vmem [shape: bf16[10,32], index: 3, kind: input, shape index: {}]   ;;  %s219_s2 = inlined_call_operand.vmem [shape: f32[1,32], index: 2, kind: input, shape index: {}]   ;;  %s220_s4 = inlined_call_operand.vmem [shape: bf16[10,32], index: 4, kind: output, shape index: {}]  }
   0x1   :  { %149 = vmatprep.subr.bf16.mxu0 %v162_v0  ;;  %v159_v1 = vld [vmem:[%s216_s1 + $0x8] sm:$0xff]   ;;  %153 = vmatprep.mubr.msk.bf16.mxu0 %vm163_vm1, %v162_v0  ;;  %23 = vst.msk [vmem:[#allocation2] sm:$0xff] %vm22_vm0, %v162_v0  ;;  %v160_v2 = vld [vmem:[%s216_s1] sm:$0xff]   ;;  %vm129_vm3 = vcmask 257024   ;;  %vm131_vm4 = vcmask 253952  }
   0x2   :  { %150 = vmatpush3.bf16.msra.mxu0 %v159_v1  ;;  %v161_v3 = vld [vmem:[%s217_s0] sm:$0x1f]   ;;  %25 = vst.msk [vmem:[#allocation2 + $0x8] sm:$0x3] %vm24_vm2, %v162_v0 }
   0x3   :  { %151 = vmatprep.subr.bf16.mxu0 %v162_v0  ;;  %v115_v11 = vld [vmem:[%s218_s3] sm:$0xf]  ;;  %v116_v16 = vld [vmem:[%s218_s3 + $0x4] sm:$0x1] }
   0x4   :  { %v141_v13 = vld [vmem:[%s219_s2] ss:$0 sm:$0xff]  ;;  %v117_v14 = vunpack.c.l.bf16 %v115_v11  ;;  %v118_v19 = vunpack.c.l.bf16 %v116_v16 }
   0x6   :  { %152 = vmatpush3.bf16.msra.mxu0 %v160_v2 }
   0x8   :  { %v26_v4 = vld [vmem:[#allocation2] sm:$0xff] }
   0x9   :  { %154 = vmatmul.mubr.msk.bf16.vlgmr.msra.gmra.mxu0 %vm22_vm0, %v161_v3  ;;  %v27_v8 = vld [vmem:[#allocation2 + $0x8] sm:$0x3] }
  0xc9   :  { %v89_v5 = vpop.f32.mrf.mxu0 }
  0xca   :  { %v96_v6 = vadd.f32 %v89_v5, %v26_v4 }
  0xcb   :  { %v155_v7 = vpop.f32.mrf.mxu0 }
  0xcc   :  { %98 = vst.msk [vmem:[#allocation2] sm:$0xff] %vm22_vm0, %v96_v6 }
  0xcd   :  { %v92_v9 = vpop.f32.mrf.mxu0 }
  0xce   :  { %v97_v10 = vadd.f32 %v92_v9, %v27_v8 }
  0xcf   :  { %v156_v12 = vpop.f32.mrf.mxu0 }
  0xd0   :  { %100 = vst.msk [vmem:[#allocation2 + $0x8] sm:$0x3] %vm24_vm2, %v97_v10 }
  0xd3   :  { %v104_v15 = vld [vmem:[#allocation2] sm:$0xff] }
  0xd4   :  { %v113_v17 = vadd.f32 %v141_v13, %v104_v15 }
  0xd6   :  { %v119_v18 = vadd.f32 %v117_v14, %v113_v17 }
  0xd7   :  { %v105_v20 = vld [vmem:[#allocation2 + $0x8] sm:$0x3] }
  0xd8   :  { %v144_v21 = vpack.c.bf16 %v119_v18, %v119_v18  ;;  %v114_v22 = vadd.f32 %v141_v13, %v105_v20 }
  0xda   :  { %130 = vst.msk [vmem:[%s220_s4] sm:$0xf] %vm129_vm3, %v144_v21  ;;  %v120_v23 = vadd.f32 %v118_v19, %v114_v22 }
  0xdc   :  { %v145_v24 = vpack.c.bf16 %v120_v23, %v120_v23 }
  0xde   :  { %132 = vst.msk [vmem:[%s220_s4 + $0x4] sm:$0x1] %vm131_vm4, %v145_v24 }

// kernel: vit_forward.23
= control target key start
LH: loop header
LB: loop body
LE: loop exit
PB: predicated region body
PF: predicated region fallthrough
CT: control target
= control target key end

     0   :  { %v211_v0 = vmov 0.0   ;;  %vm212_vm0 = vmmov 0   ;;  %vm46_vm1 = vcmask 261120   ;;  %v213_v47 = vmov -1.0   ;;  %s252_s1 = inlined_call_operand.vmem [shape: bf16[32,128], index: 1, kind: input, shape index: {}]   ;;  %s253_s0 = inlined_call_operand.vmem [shape: bf16[10,32], index: 0, kind: input, shape index: {}]   ;;  %s254_s2 = inlined_call_operand.vmem [shape: f32[1,128], index: 2, kind: input, shape index: {}]   ;;  %s255_s3 = inlined_call_operand.vmem [shape: bf16[10,128], index: 3, kind: output, shape index: {}]  }
   0x1   :  { %189 = vmatprep.subr.bf16.mxu0 %v211_v0  ;;  %20 = vst [vmem:[#allocation2 + $0x8] sm:$0x3] %v211_v0  ;;  %v200_v1 = vld [vmem:[%s252_s1 + $0x8] sm:$0xff]   ;;  %193 = vmatprep.mubr.msk.bf16.mxu0 %vm212_vm0, %v211_v0  ;;  %v201_v2 = vld [vmem:[%s252_s1] sm:$0xff]  }
   0x2   :  { %190 = vmatpush3.bf16.msra.mxu0 %v200_v1  ;;  %v202_v3 = vld [vmem:[%s253_s0] sm:$0x1f]  }
   0x3   :  { %191 = vmatprep.subr.bf16.mxu0 %v211_v0  ;;  %v181_v5 = vld [vmem:[%s254_s2] ss:$0 sm:$0xff] }
   0x6   :  { %192 = vmatpush3.bf16.msra.mxu0 %v201_v2 }
   0x8   :  { %v22_v7 = vld [vmem:[#allocation2 + $0x8] sm:$0x3] }
   0x9   :  { %194 = vmatmul.mubr.msk.bf16.vlgmr.msra.gmra.mxu0 %vm46_vm1, %v202_v3 }
  0xc9   :  { %v84_v4 = vpop.f32.mrf.mxu0 }
  0xca   :  { %v107_v8 = vadd.f32 %v181_v5, %v84_v4 }
  0xcb   :  { %v195_v6 = vpop.f32.mrf.mxu0 }
  0xcc   :  { %v111_v10 = vmul.f32 0.70710677, %v107_v8  ;;  %v109_v51 = vmul.f32 0.5, %v107_v8 }
  0xcd   :  { %v87_v9 = vpop.f32.mrf.mxu0 }
  0xce   :  { %v92_v11 = vadd.f32 %v87_v9, %v22_v7  ;;  %v117_v13 = vand.u32 2147483647, %v111_v10  ;;  %vm113_vm2 = vcmp.ge.f32.partialorder %v111_v10, 0.0 }
  0xcf   :  { %v196_v12 = vpop.f32.mrf.mxu0  ;;  %v115_v48 = vsel %vm113_vm2, 1.0, %v213_v47 }
  0xd0   :  { %94 = vst [vmem:[#allocation2 + $0x8] sm:$0x3] %v92_v11  ;;  %v119_v14 = vmul.f32 0.3275911, %v117_v13  ;;  %v145_v19 = vsub.f32 0.0, %v117_v13 }
  0xd2   :  { %v121_v15 = vadd.f32 1.0, %v119_v14  ;;  %v147_v22 = vmul.f32 %v145_v19, %v117_v13 }
  0xd4   :  { %203 = vrcp.f32 %v121_v15  ;;  %v149_v26 = vmul.f32 1.442695, %v147_v22 }
  0xd7   :  { %v99_v16 = vld [vmem:[#allocation2 + $0x8] sm:$0x3] }
  0xd8   :  { %v108_v17 = vadd.f32 %v181_v5, %v99_v16 }
  0xda   :  { %v112_v18 = vmul.f32 0.70710677, %v108_v17  ;;  %v110_v63 = vmul.f32 0.5, %v108_v17 }
  0xdc   :  { %v118_v20 = vand.u32 2147483647, %v112_v18  ;;  %vm114_vm3 = vcmp.ge.f32.partialorder %v112_v18, 0.0 }
  0xdd   :  { %v116_v61 = vsel %vm114_vm3, 1.0, %v213_v47 }
  0xde   :  { %v120_v21 = vmul.f32 0.3275911, %v118_v20  ;;  %v146_v29 = vsub.f32 0.0, %v118_v20 }
  0xe0   :  { %v122_v23 = vadd.f32 1.0, %v120_v21  ;;  %v148_v32 = vmul.f32 %v146_v29, %v118_v20 }
  0xe1   :  { %v204_v24 = vpop.eup %203 }
  0xe2   :  { %205 = vrcp.f32 %v122_v23  ;;  %v127_v25 = vmul.f32 1.0614054, %v204_v24  ;;  %v151_v37 = vmul.f32 1.442695, %v148_v32 }
  0xe3   :  { %207 = vpow2.f32 %v149_v26 }
  0xe4   :  { %v129_v27 = vadd.f32 -1.4531521, %v127_v25  ;;  %209 = vpow2.f32 %v151_v37 }
  0xe6   :  { %v131_v28 = vmul.f32 %v204_v24, %v129_v27 }
  0xe8   :  { %v133_v30 = vadd.f32 1.4214138, %v131_v28 }
  0xea   :  { %v135_v31 = vmul.f32 %v204_v24, %v133_v30 }
  0xec   :  { %v137_v33 = vadd.f32 -0.28449672, %v135_v31 }
  0xee   :  { %v139_v35 = vmul.f32 %v204_v24, %v137_v33 }
  0xef   :  { %v206_v34 = vpop.eup %205 }
  0xf0   :  { %v128_v36 = vmul.f32 1.0614054, %v206_v34  ;;  %v141_v38 = vadd.f32 0.2548296, %v139_v35  ;;  %v208_v42 = vpop.eup %207 }
  0xf1   :  { %v210_v58 = vpop.eup %209 }
  0xf2   :  { %v130_v39 = vadd.f32 -1.4531521, %v128_v36  ;;  %v143_v40 = vmul.f32 %v204_v24, %v141_v38 }
  0xf4   :  { %v132_v41 = vmul.f32 %v206_v34, %v130_v39  ;;  %v153_v43 = vmul.f32 %v208_v42, %v143_v40 }
  0xf6   :  { %v134_v44 = vadd.f32 1.4214138, %v132_v41  ;;  %v155_v45 = vsub.f32 1.0, %v153_v43 }
  0xf8   :  { %v136_v46 = vmul.f32 %v206_v34, %v134_v44  ;;  %v157_v49 = vmul.f32 %v155_v45, %v115_v48 }
  0xfa   :  { %v138_v50 = vadd.f32 -0.28449672, %v136_v46  ;;  %v159_v52 = vadd.f32 1.0, %v157_v49 }
  0xfc   :  { %v140_v53 = vmul.f32 %v206_v34, %v138_v50  ;;  %v161_v54 = vmul.f32 %v159_v52, %v109_v51 }
  0xfe   :  { %v142_v55 = vadd.f32 0.2548296, %v140_v53  ;;  %v184_v56 = vpack.c.bf16 %v161_v54, %v161_v54 }
 0x100   :  { %v144_v57 = vmul.f32 %v206_v34, %v142_v55  ;;  %171 = vst [vmem:[%s255_s3] sm:$0xf] %v184_v56 }
 0x102   :  { %v154_v59 = vmul.f32 %v210_v58, %v144_v57 }
 0x104   :  { %v156_v60 = vsub.f32 1.0, %v154_v59 }
 0x106   :  { %v158_v62 = vmul.f32 %v156_v60, %v116_v61 }
 0x108   :  { %v160_v0 = vadd.f32 1.0, %v158_v62 }
 0x10a   :  { %v162_v1 = vmul.f32 %v160_v0, %v110_v63 }
 0x10c   :  { %v185_v2 = vpack.c.bf16 %v162_v1, %v162_v1 }
 0x10e   :  { %172 = vst [vmem:[%s255_s3 + $0x4] sm:$0x1] %v185_v2 }

// kernel: vit_forward.24
= control target key start
LH: loop header
LB: loop body
LE: loop exit
PB: predicated region body
PF: predicated region fallthrough
CT: control target
= control target key end

     0   :  { %vm22_vm0 = vcmask 261120   ;;  %v237_v0 = vmov 0.0   ;;  %vm238_vm1 = vmmov 0   ;;  %vm24_vm2 = vcmask 254976   ;;  %s308_s1 = inlined_call_operand.vmem [shape: bf16[128,32], index: 1, kind: input, shape index: {}]   ;;  %s309_s0 = inlined_call_operand.vmem [shape: bf16[10,128], index: 0, kind: input, shape index: {}]   ;;  %s310_s3 = inlined_call_operand.vmem [shape: bf16[10,32], index: 3, kind: input, shape index: {}]   ;;  %s311_s2 = inlined_call_operand.vmem [shape: f32[1,32], index: 2, kind: input, shape index: {}]   ;;  %s312_s4 = inlined_call_operand.vmem [shape: bf16[10,32], index: 4, kind: output, shape index: {}]  }
   0x1   :  { %206 = vmatprep.subr.bf16.mxu0 %v237_v0  ;;  %v228_v1 = vld [vmem:[%s308_s1 + $0x38] sm:$0xff]   ;;  %222 = vmatprep.mubr.msk.bf16.mxu0 %vm238_vm1, %v237_v0  ;;  %23 = vst.msk [vmem:[#allocation2] sm:$0xff] %vm22_vm0, %v237_v0  ;;  %v229_v2 = vld [vmem:[%s308_s1 + $0x30] sm:$0xff]   ;;  %v230_v3 = vld [vmem:[%s308_s1 + $0x28] sm:$0xff]   ;;  %vm175_vm3 = vcmask 257024   ;;  %vm177_vm4 = vcmask 253952  }
   0x2   :  { %207 = vmatpush3.bf16.msra.mxu0 %v228_v1  ;;  %v231_v4 = vld [vmem:[%s308_s1 + $0x20] sm:$0xff]   ;;  %v232_v5 = vld [vmem:[%s308_s1 + $0x18] sm:$0xff]   ;;  %v233_v6 = vld [vmem:[%s308_s1 + $0x10] sm:$0xff]   ;;  %25 = vst.msk [vmem:[#allocation2 + $0x8] sm:$0x3] %vm24_vm2, %v237_v0 }
   0x3   :  { %208 = vmatprep.subr.bf16.mxu0 %v237_v0  ;;  %v234_v7 = vld [vmem:[%s308_s1 + $0x8] sm:$0xff]   ;;  %v235_v8 = vld [vmem:[%s308_s1] sm:$0xff]  }
   0x4   :  { %v236_v9 = vld [vmem:[%s309_s0] sm:$0x1f]  }
   0x5   :  { %v161_v17 = vld [vmem:[%s310_s3] sm:$0xf]  ;;  %v162_v22 = vld [vmem:[%s310_s3 + $0x4] sm:$0x1] }
   0x6   :  { %209 = vmatpush3.bf16.msra.mxu0 %v229_v2  ;;  %v192_v19 = vld [vmem:[%s311_s2] ss:$0 sm:$0xff]  ;;  %v163_v20 = vunpack.c.l.bf16 %v161_v17  ;;  %v164_v25 = vunpack.c.l.bf16 %v162_v22 }
   0x7   :  { %210 = vmatprep.subr.bf16.mxu0 %v237_v0 }
   0x8   :  { %v26_v10 = vld [vmem:[#allocation2] sm:$0xff] }
   0x9   :  { %v27_v14 = vld [vmem:[#allocation2 + $0x8] sm:$0x3] }
   0xa   :  { %211 = vmatpush3.bf16.msra.mxu0 %v230_v3 }
   0xb   :  { %212 = vmatprep.subr.bf16.mxu0 %v237_v0 }
   0xe   :  { %213 = vmatpush3.bf16.msra.mxu0 %v231_v4 }
   0xf   :  { %214 = vmatprep.subr.bf16.mxu0 %v237_v0 }
  0x12   :  { %215 = vmatpush3.bf16.msra.mxu0 %v232_v5 }
  0x13   :  { %216 = vmatprep.subr.bf16.mxu0 %v237_v0 }
  0x16   :  { %217 = vmatpush3.bf16.msra.mxu0 %v233_v6 }
  0x17   :  { %218 = vmatprep.subr.bf16.mxu0 %v237_v0 }
  0x1a   :  { %219 = vmatpush3.bf16.msra.mxu0 %v234_v7 }
  0x1b   :  { %220 = vmatprep.subr.bf16.mxu0 %v237_v0 }
  0x1e   :  { %221 = vmatpush3.bf16.msra.mxu0 %v235_v8 }
  0x21   :  { %223 = vmatmul.mubr.bf16.vlgmr.msra.gmra.mxu0 %v236_v9 }
  0xe1   :  { %v134_v11 = vpop.f32.mrf.mxu0 }
  0xe2   :  { %v141_v12 = vadd.f32 %v134_v11, %v26_v10 }
  0xe3   :  { %v224_v13 = vpop.f32.mrf.mxu0 }
  0xe4   :  { %144 = vst.msk [vmem:[#allocation2] sm:$0xff] %vm22_vm0, %v141_v12 }
  0xe5   :  { %v137_v15 = vpop.f32.mrf.mxu0 }
  0xe6   :  { %v142_v16 = vadd.f32 %v137_v15, %v27_v14 }
  0xe7   :  { %v225_v18 = vpop.f32.mrf.mxu0 }
  0xe8   :  { %146 = vst.msk [vmem:[#allocation2 + $0x8] sm:$0x3] %vm24_vm2, %v142_v16 }
  0xeb   :  { %v150_v21 = vld [vmem:[#allocation2] sm:$0xff] }
  0xec   :  { %v159_v23 = vadd.f32 %v192_v19, %v150_v21 }
  0xee   :  { %v165_v24 = vadd.f32 %v163_v20, %v159_v23 }
  0xef   :  { %v151_v26 = vld [vmem:[#allocation2 + $0x8] sm:$0x3] }
  0xf0   :  { %v195_v27 = vpack.c.bf16 %v165_v24, %v165_v24  ;;  %v160_v28 = vadd.f32 %v192_v19, %v151_v26 }
  0xf2   :  { %176 = vst.msk [vmem:[%s312_s4] sm:$0xf] %vm175_vm3, %v195_v27  ;;  %v166_v29 = vadd.f32 %v164_v25, %v160_v28 }
  0xf4   :  { %v196_v30 = vpack.c.bf16 %v166_v29, %v166_v29 }
  0xf6   :  { %178 = vst.msk [vmem:[%s312_s4 + $0x4] sm:$0x1] %vm177_vm4, %v196_v30 }

// kernel: vit_forward.33
= control target key start
LH: loop header
LB: loop body
LE: loop exit
PB: predicated region body
PF: predicated region fallthrough
CT: control target
= control target key end

     0   :  { %vm21_vm0 = vcmask 1024   ;;  %v124_v0 = vmov 0.0   ;;  %vm125_vm1 = vmmov 0   ;;  %vm41_vm2 = vcmask 261120   ;;  %s164_s1 = inlined_call_operand.vmem [shape: bf16[32,1], index: 1, kind: input, shape index: {}]   ;;  %s165_s2 = inlined_call_operand.<no memory space> [shape: f32[1,1], index: 2, kind: input, shape index: {}]   ;;  %s166_s0 = inlined_call_operand.vmem [shape: bf16[2,32], index: 0, kind: input, shape index: {}]   ;;  %s167_s3 = inlined_call_operand.vmem [shape: f32[2,1], index: 3, kind: output, shape index: {}]  }
   0x1   :  { %22 = vst.msk [vmem:[#allocation2] sm:$0x3] %vm21_vm0, %v124_v0  ;;  %112 = vmatprep.subr.bf16.mxu0 %v124_v0  ;;  %v122_v1 = vld [vmem:[%s164_s1 + $0x8] sm:$0xff]   ;;  %116 = vmatprep.mubr.msk.bf16.mxu0 %vm125_vm1, %v124_v0  ;;  %v8_v2 = vstv %s165_s2  ;;  %v123_v3 = vld [vmem:[%s164_s1] sm:$0xff]  }
   0x2   :  { %9 = vst [vmem:[#allocation3] sm:$0x1] %v8_v2  ;;  %113 = vmatpush3.bf16.msra.mxu0 %v122_v1  ;;  %v24_v4 = vld [vmem:[%s166_s0] sm:$0x1] }
   0x3   :  { %114 = vmatprep.subr.bf16.mxu0 %v124_v0 }
   0x6   :  { %115 = vmatpush3.bf16.msra.mxu0 %v123_v3 }
   0x8   :  { %v23_v5 = vld [vmem:[#allocation2] sm:$0x3] }
   0x9   :  { %117 = vmatmul.mubr.msk.bf16.vlgmr.msra.gmra.mxu0 %vm41_vm2, %v24_v4  ;;  %v108_v11 = vld [vmem:[#allocation3] ss:$0 sm:$0xff] }
  0xc9   :  { %v79_v6 = vpop.f32.mrf.mxu0 }
  0xca   :  { %v85_v7 = vadd.f32 %v79_v6, %v23_v5 }
  0xcb   :  { %v118_v8 = vpop.f32.mrf.mxu0 }
  0xcc   :  { %87 = vst.msk [vmem:[#allocation2] sm:$0x3] %vm21_vm0, %v85_v7 }
  0xcd   :  { %v82_v9 = vpop.f32.mrf.mxu0 }
  0xcf   :  { %v119_v10 = vpop.f32.mrf.mxu0 }
  0xd3   :  { %v91_v12 = vld [vmem:[#allocation2] sm:$0x3] }
  0xd4   :  { %v99_v13 = vadd.f32 %v108_v11, %v91_v12 }
  0xd6   :  { %100 = vst.msk [vmem:[%s167_s3] sm:$0x3] %vm21_vm0, %v99_v13 }

</bundles_post_ra>
